<compile_context>
chip_gen: v7x
topology: tpu7x:2x2x1
jax: 0.10.0
libtpu: 0.0.40
codegen_flags: <defaults>
</compile_context>

<pallas_src>
import functools

import numpy as np
import jax
import jax.numpy as jnp
from jax.experimental import pallas as pl
from jax.experimental.pallas import tpu as pltpu


# ----------------------------- Fused Pallas kernel ---------------------------

def make_gru_encoder_kernel(n_layers, T, Bp, H):
    """Builds the fused kernel for static (n_layers, T, Bp, H). Bp is 8-padded batch."""
    H2, H4, H6 = 2 * H, 4 * H, 6 * H

    def kernel(*refs):
        # ---- unpack refs (layout fixed by the wrapper) ----
        idx = 0
        x_ref = refs[idx]; idx += 1          # (T*Bp, H)   layer-0 input
        xrev_ref = refs[idx]; idx += 1       # (T*Bp, H)   layer-0 input, time-reversed
        layer_refs = []
        for _ in range(n_layers):            # per layer: wih_f, wih_b, whh_blk, b_gi, b_hn
            layer_refs.append(refs[idx:idx + 5]); idx += 5
        fc_w_ref, fc_b_ref, ln_g_ref, ln_b_ref = refs[idx:idx + 4]; idx += 4
        out_ref = refs[idx]                  # (T*Bp, 2H)
        hid_ref = refs[idx + 1]              # (n_layers*Bp, H)

        # Lane mask: forward-direction columns of a [h_f | h_b] (Bp, 2H) slab.
        col = jax.lax.broadcasted_iota(jnp.int32, (Bp, H2), dimension=1)
        fwd_cols = col < H

        cur = x_ref[...]                     # layer input (time t order)
        cur_rev = xrev_ref[...]              # layer input (time T-1-t order)

        # PyTorch h_n ordering: index = layer * 2 + direction (0=fwd, 1=bwd).
        hid_final = [None] * (2 * n_layers)

        for l in range(n_layers):
            wih_f, wih_b, whh, b_gi, b_hn = layer_refs[l]

            # Hoisted input projection for BOTH directions, directly in the fused gate
            # layout [r_f, r_b, z_f, z_b, n_f, n_b]; b_hh for r/z is already folded into
            # b_gi by the wrapper.  Row block t holds fwd time t and bwd time T-1-t.
            gi = (jnp.dot(cur, wih_f[...], preferred_element_type=jnp.float32)
                  + jnp.dot(cur_rev, wih_b[...], preferred_element_type=jnp.float32)
                  + b_gi[...])                                        # (T*Bp, 6H)

            whh_v = whh[...]                                          # (2H, 6H) block-diag
            b_hn_v = jnp.broadcast_to(b_hn[...], (Bp, H2))            # hoisted broadcast

            h_cat = jnp.zeros((Bp, H2), jnp.float32)                  # [h_f | h_b]
            hsteps = []
            # Serial recurrence: one fused (Bp,2H)x(2H,6H) MXU push + gate math per step.
            for t in range(T):
                gi_t = gi[t * Bp:(t + 1) * Bp, :]                     # tile-aligned view
                gh = jnp.dot(h_cat, whh_v, preferred_element_type=jnp.float32)
                rz = jax.nn.sigmoid(gi_t[:, 0:H4] + gh[:, 0:H4])      # 128-lane slab
                r = rz[:, 0:H2]
                z = rz[:, H2:H4]
                n = jnp.tanh(gi_t[:, H4:H6] + r * (gh[:, H4:H6] + b_hn_v))
                h_cat = (1.0 - z) * n + z * h_cat
                hsteps.append(h_cat)

            hid_final[2 * l] = h_cat[:, 0:H]        # final fwd hidden of layer l
            hid_final[2 * l + 1] = h_cat[:, H:H2]   # final bwd hidden of layer l

            # Per-time output block t = [fwd(t) | bwd(t)].  fwd(t) lives in hsteps[t],
            # bwd(t) lives in hsteps[T-1-t]; stitch with a lane select (no stores).
            blocks = [jnp.where(fwd_cols, hsteps[t], hsteps[T - 1 - t]) for t in range(T)]
            layer_out = jnp.concatenate(blocks, axis=0)               # (T*Bp, 2H)

            if l + 1 < n_layers:
                cur = layer_out
                cur_rev = jnp.concatenate(blocks[::-1], axis=0)       # time-reversed input
            else:
                out_ref[...] = layer_out                              # ONE dense store

        # ---- fc(2H -> H) + LayerNorm head, fused over all 2L hidden rows ----
        # PyTorch: cat([h_n[0:L], h_n[L:2L]], dim=2) -> row i pairs hid_final[i] with
        # hid_final[L+i].  Split fc_w into (H,H) halves -> no in-kernel feature concat.
        L = n_layers
        first = jnp.concatenate(hid_final[0:L], axis=0)               # (L*Bp, H)
        second = jnp.concatenate(hid_final[L:2 * L], axis=0)          # (L*Bp, H)
        y = (jnp.dot(first, fc_w_ref[0:H, :], preferred_element_type=jnp.float32)
             + jnp.dot(second, fc_w_ref[H:H2, :], preferred_element_type=jnp.float32)
             + fc_b_ref[...])
        mu = jnp.mean(y, axis=-1, keepdims=True)
        var = jnp.mean((y - mu) ** 2, axis=-1, keepdims=True)
        yn = (y - mu) * jax.lax.rsqrt(var + 1e-5)
        hid_ref[...] = yn * ln_g_ref[...] + ln_b_ref[...]             # ONE dense store

    return kernel


# --------------------------- Wrapper-side weight packing ----------------------

def _scatter_gate_cols(w_f, w_b, H):
    """(K,3H) per-direction weights (gate order r|z|n) -> two (K,6H) parts laid out as
    [r_f, r_b, z_f, z_b, n_f, n_b], zeros in the other direction's columns."""
    zf = jnp.zeros((w_f.shape[0], H), w_f.dtype)
    zb = jnp.zeros((w_b.shape[0], H), w_b.dtype)
    part_f = jnp.concatenate(
        [w_f[:, 0:H], zf, w_f[:, H:2 * H], zf, w_f[:, 2 * H:3 * H], zf], axis=1)
    part_b = jnp.concatenate(
        [zb, w_b[:, 0:H], zb, w_b[:, H:2 * H], zb, w_b[:, 2 * H:3 * H]], axis=1)
    return part_f, part_b


# ------------------------------ Wrapper ---------------------------------------

def gru_encoder_forward(x, params, *, n_layers, hidden_dim):
    """Mirrors GRUEncoder.forward.  x: (T, B, H).  Returns (outputs, hidden)."""
    T, B, Hin = x.shape
    H = hidden_dim
    Bp = ((B + 7) // 8) * 8                      # pad batch to the 8-sublane tile

    xp = jnp.pad(x.astype(jnp.float32), ((0, 0), (0, Bp - B), (0, 0)))
    x2d = xp.reshape(T * Bp, Hin)                # (T*Bp, H), time-major row blocks
    x2d_rev = xp[::-1].reshape(T * Bp, Hin)      # same, time-reversed (for bwd direction)

    inputs = [x2d, x2d_rev]
    for l in range(n_layers):
        p = params["gru"][l]
        wih_f, wih_b = _scatter_gate_cols(p["w_ih_f"], p["w_ih_b"], H)
        whh_f, whh_b = _scatter_gate_cols(p["w_hh_f"], p["w_hh_b"], H)
        whh_blk = jnp.concatenate([whh_f, whh_b], axis=0)     # (2H, 6H) block-diagonal
        bihf, bihb = p["b_ih_f"], p["b_ih_b"]
        bhhf, bhhb = p["b_hh_f"], p["b_hh_b"]
        # Fold b_hh for r/z into the hoisted projection bias; keep b_hn separate.
        b_gi = jnp.concatenate(
            [bihf[:, 0:H] + bhhf[:, 0:H], bihb[:, 0:H] + bhhb[:, 0:H],
             bihf[:, H:2 * H] + bhhf[:, H:2 * H], bihb[:, H:2 * H] + bhhb[:, H:2 * H],
             bihf[:, 2 * H:3 * H], bihb[:, 2 * H:3 * H]], axis=1)       # (1, 6H)
        b_hn = jnp.concatenate([bhhf[:, 2 * H:3 * H], bhhb[:, 2 * H:3 * H]], axis=1)
        inputs += [wih_f, wih_b, whh_blk, b_gi, b_hn]
    inputs += [params["fc_w"], params["fc_b"], params["ln_g"], params["ln_b"]]

    in_specs = [pl.BlockSpec(a.shape, lambda i: (0, 0)) for a in inputs]

    kernel = make_gru_encoder_kernel(n_layers, T, Bp, H)

    out2d, hid2d = pl.pallas_call(
        kernel,
        out_shape=(jax.ShapeDtypeStruct((T * Bp, 2 * H), jnp.float32),
                   jax.ShapeDtypeStruct((n_layers * Bp, H), jnp.float32)),
        grid_spec=pltpu.PrefetchScalarGridSpec(
            num_scalar_prefetch=0,
            grid=(1,),
            in_specs=in_specs,
            out_specs=(pl.BlockSpec((T * Bp, 2 * H), lambda i: (0, 0)),
                       pl.BlockSpec((n_layers * Bp, H), lambda i: (0, 0)))),
        compiler_params=pltpu.CompilerParams(
            dimension_semantics=("arbitrary",),
            vmem_limit_bytes=32 * 1024 * 1024),
    )(*inputs)

    outputs = out2d.reshape(T, Bp, 2 * H)[:, :B, :]       # (T, B, 2H) like nn.GRU outputs
    hidden = hid2d.reshape(n_layers, Bp, H)[:, :B, :]     # (L, B, H) fc(cat(...)) head
    return outputs, hidden


# --------------------------- Parameter init ---------------------------------

def init_params(key, hidden_dim, n_layers):
    H = hidden_dim
    k = 1.0 / np.sqrt(H)
    params = {"gru": []}
    for l in range(n_layers):
        Din = H if l == 0 else 2 * H
        layer = {}
        for d in ("f", "b"):
            key, k1, k2, k3, k4 = jax.random.split(key, 5)
            layer[f"w_ih_{d}"] = jax.random.uniform(k1, (Din, 3 * H), jnp.float32, -k, k)
            layer[f"w_hh_{d}"] = jax.random.uniform(k2, (H, 3 * H), jnp.float32, -k, k)
            layer[f"b_ih_{d}"] = jax.random.uniform(k3, (1, 3 * H), jnp.float32, -k, k)
            layer[f"b_hh_{d}"] = jax.random.uniform(k4, (1, 3 * H), jnp.float32, -k, k)
        params["gru"].append(layer)
    key, k1, k2 = jax.random.split(key, 3)
    kf = 1.0 / np.sqrt(2 * H)
    params["fc_w"] = jax.random.uniform(k1, (2 * H, H), jnp.float32, -kf, kf)
    params["fc_b"] = jax.random.uniform(k2, (1, H), jnp.float32, -kf, kf)
    params["ln_g"] = jnp.ones((1, H), jnp.float32)
    params["ln_b"] = jnp.zeros((1, H), jnp.float32)
    return params


# ----------------------- Pure-JAX reference (for check) ---------------------

_HP = jax.lax.Precision.HIGHEST


def _ref_gru_dir(x, h0, w_ih, w_hh, b_ih, b_hh, reverse):
    T = x.shape[0]
    H = h0.shape[-1]
    h = h0
    outs = [None] * T
    ts = range(T - 1, -1, -1) if reverse else range(T)
    for t in ts:
        gi = jnp.dot(x[t], w_ih, precision=_HP) + b_ih
        gh = jnp.dot(h, w_hh, precision=_HP) + b_hh
        r = jax.nn.sigmoid(gi[:, :H] + gh[:, :H])
        z = jax.nn.sigmoid(gi[:, H:2 * H] + gh[:, H:2 * H])
        n = jnp.tanh(gi[:, 2 * H:] + r * gh[:, 2 * H:])
        h = (1.0 - z) * n + z * h
        outs[t] = h
    return jnp.stack(outs, 0), h


def ref_forward(x, params, *, n_layers, hidden_dim):
    T, B, _ = x.shape
    H = hidden_dim
    layer_in = x
    hn_list = []
    for l in range(n_layers):
        p = params["gru"][l]
        h0 = jnp.zeros((B, H), jnp.float32)
        of, hf = _ref_gru_dir(layer_in, h0, p["w_ih_f"], p["w_hh_f"], p["b_ih_f"], p["b_hh_f"], False)
        ob, hb = _ref_gru_dir(layer_in, h0, p["w_ih_b"], p["w_hh_b"], p["b_ih_b"], p["b_hh_b"], True)
        layer_in = jnp.concatenate([of, ob], axis=-1)
        hn_list += [hf, hb]
    outputs = layer_in
    hidden = jnp.stack(hn_list, 0)
    # Matches PyTorch: cat([h_n[0:L], h_n[L:2L]], dim=2).
    hid_cat = jnp.concatenate([hidden[0:n_layers], hidden[n_layers:2 * n_layers]], axis=2)
    y = jnp.matmul(hid_cat, params["fc_w"], precision=_HP) + params["fc_b"]
    mu = jnp.mean(y, -1, keepdims=True)
    var = jnp.mean((y - mu) ** 2, -1, keepdims=True)
    yn = (y - mu) * jax.lax.rsqrt(var + 1e-5)
    return outputs, yn * params["ln_g"] + params["ln_b"]


# --------------------------------- Main --------------------------------------

if __name__ == "__main__":
    SEQ, BATCH, HIDDEN, N_LAYERS = 8, 4, 32, 2

    key = jax.random.PRNGKey(0)
    key, kx, kp = jax.random.split(key, 3)
    x = jax.random.normal(kx, (SEQ, BATCH, HIDDEN), jnp.float32)
    params = init_params(kp, HIDDEN, N_LAYERS)

    fwd = jax.jit(functools.partial(gru_encoder_forward,
                                    n_layers=N_LAYERS, hidden_dim=HIDDEN))
    outputs, hidden = fwd(x, params)
    jax.block_until_ready((outputs, hidden))

    # Tolerance tightened 4x vs. previous (2e-2 -> 5e-3) so gate-order / bias-folding
    # regressions are caught; the residual slack covers MXU f32 pass-mode differences
    # between the Pallas matmuls and the HIGHEST-precision XLA reference.
    ref_out, ref_hid = ref_forward(x, params, n_layers=N_LAYERS, hidden_dim=HIDDEN)
    assert outputs.shape == (SEQ, BATCH, 2 * HIDDEN)
    assert hidden.shape == (N_LAYERS, BATCH, HIDDEN)
    np.testing.assert_allclose(np.asarray(outputs), np.asarray(ref_out), atol=5e-3, rtol=5e-3)
    np.testing.assert_allclose(np.asarray(hidden), np.asarray(ref_hid), atol=5e-3, rtol=5e-3)

    print("KERNEL_OK")
</pallas_src>

<mosaic_0001>
module attributes {stable_mosaic.version = 11 : i64} {
  func.func @kernel(%arg0: i32, %arg1: memref<64x32xf32, #tpu.memory_space<vmem>>, %arg2: memref<64x32xf32, #tpu.memory_space<vmem>>, %arg3: memref<32x192xf32, #tpu.memory_space<vmem>>, %arg4: memref<32x192xf32, #tpu.memory_space<vmem>>, %arg5: memref<64x192xf32, #tpu.memory_space<vmem>>, %arg6: memref<1x192xf32, #tpu.memory_space<vmem>>, %arg7: memref<1x64xf32, #tpu.memory_space<vmem>>, %arg8: memref<64x192xf32, #tpu.memory_space<vmem>>, %arg9: memref<64x192xf32, #tpu.memory_space<vmem>>, %arg10: memref<64x192xf32, #tpu.memory_space<vmem>>, %arg11: memref<1x192xf32, #tpu.memory_space<vmem>>, %arg12: memref<1x64xf32, #tpu.memory_space<vmem>>, %arg13: memref<64x32xf32, #tpu.memory_space<vmem>>, %arg14: memref<1x32xf32, #tpu.memory_space<vmem>>, %arg15: memref<1x32xf32, #tpu.memory_space<vmem>>, %arg16: memref<1x32xf32, #tpu.memory_space<vmem>>, %arg17: memref<64x64xf32, #tpu.memory_space<vmem>>, %arg18: memref<16x32xf32, #tpu.memory_space<vmem>>) attributes {dimension_semantics = [#tpu.dimension_semantics<arbitrary>], iteration_bounds = array<i64: 1>, scalar_prefetch = 0 : i64, scratch_operands = 0 : i64, tpu.core_type = #tpu.core_type<tc>, window_params = [{pipeline_mode = #tpu.pipeline_mode<synchronous>, transform_indices = @transform_0, window_bounds = array<i64: 64, 32>}, {pipeline_mode = #tpu.pipeline_mode<synchronous>, transform_indices = @transform_1, window_bounds = array<i64: 64, 32>}, {pipeline_mode = #tpu.pipeline_mode<synchronous>, transform_indices = @transform_2, window_bounds = array<i64: 32, 192>}, {pipeline_mode = #tpu.pipeline_mode<synchronous>, transform_indices = @transform_3, window_bounds = array<i64: 32, 192>}, {pipeline_mode = #tpu.pipeline_mode<synchronous>, transform_indices = @transform_4, window_bounds = array<i64: 64, 192>}, {pipeline_mode = #tpu.pipeline_mode<synchronous>, transform_indices = @transform_5, window_bounds = array<i64: 1, 192>}, {pipeline_mode = #tpu.pipeline_mode<synchronous>, transform_indices = @transform_6, window_bounds = array<i64: 1, 64>}, {pipeline_mode = #tpu.pipeline_mode<synchronous>, transform_indices = @transform_7, window_bounds = array<i64: 64, 192>}, {pipeline_mode = #tpu.pipeline_mode<synchronous>, transform_indices = @transform_8, window_bounds = array<i64: 64, 192>}, {pipeline_mode = #tpu.pipeline_mode<synchronous>, transform_indices = @transform_9, window_bounds = array<i64: 64, 192>}, {pipeline_mode = #tpu.pipeline_mode<synchronous>, transform_indices = @transform_10, window_bounds = array<i64: 1, 192>}, {pipeline_mode = #tpu.pipeline_mode<synchronous>, transform_indices = @transform_11, window_bounds = array<i64: 1, 64>}, {pipeline_mode = #tpu.pipeline_mode<synchronous>, transform_indices = @transform_12, window_bounds = array<i64: 64, 32>}, {pipeline_mode = #tpu.pipeline_mode<synchronous>, transform_indices = @transform_13, window_bounds = array<i64: 1, 32>}, {pipeline_mode = #tpu.pipeline_mode<synchronous>, transform_indices = @transform_14, window_bounds = array<i64: 1, 32>}, {pipeline_mode = #tpu.pipeline_mode<synchronous>, transform_indices = @transform_15, window_bounds = array<i64: 1, 32>}, {pipeline_mode = #tpu.pipeline_mode<synchronous>, transform_indices = @transform_16, window_bounds = array<i64: 64, 64>}, {pipeline_mode = #tpu.pipeline_mode<synchronous>, transform_indices = @transform_17, window_bounds = array<i64: 16, 32>}]} {
    %0 = tpu.iota {dimensions = array<i32: 1>} : vector<8x64xi32>
    %c32_i32 = arith.constant 32 : i32
    %1 = vector.broadcast %c32_i32 : i32 to vector<8x64xi32>
    %2 = arith.cmpi slt, %0, %1 : vector<8x64xi32>
    %c0 = arith.constant 0 : index
    %c0_0 = arith.constant 0 : index
    %3 = vector.load %arg1[%c0, %c0_0] : memref<64x32xf32, #tpu.memory_space<vmem>>, vector<64x32xf32>
    %c0_1 = arith.constant 0 : index
    %c0_2 = arith.constant 0 : index
    %4 = vector.load %arg2[%c0_1, %c0_2] : memref<64x32xf32, #tpu.memory_space<vmem>>, vector<64x32xf32>
    %c0_3 = arith.constant 0 : index
    %c0_4 = arith.constant 0 : index
    %5 = vector.load %arg3[%c0_3, %c0_4] : memref<32x192xf32, #tpu.memory_space<vmem>>, vector<32x192xf32>
    %cst = arith.constant dense<0.000000e+00> : vector<64x192xf32>
    %6 = tpu.matmul %3, %5, %cst {dimension_numbers = #tpu.dot_dimension_numbers<[1], [0], [0], [1], [0, 0, 1, 1], [], []>} : vector<64x32xf32>, vector<32x192xf32>, vector<64x192xf32> -> vector<64x192xf32>
    %c0_5 = arith.constant 0 : index
    %c0_6 = arith.constant 0 : index
    %7 = vector.load %arg4[%c0_5, %c0_6] : memref<32x192xf32, #tpu.memory_space<vmem>>, vector<32x192xf32>
    %cst_7 = arith.constant dense<0.000000e+00> : vector<64x192xf32>
    %8 = tpu.matmul %4, %7, %cst_7 {dimension_numbers = #tpu.dot_dimension_numbers<[1], [0], [0], [1], [0, 0, 1, 1], [], []>} : vector<64x32xf32>, vector<32x192xf32>, vector<64x192xf32> -> vector<64x192xf32>
    %9 = arith.addf %6, %8 : vector<64x192xf32>
    %c0_8 = arith.constant 0 : index
    %c0_9 = arith.constant 0 : index
    %10 = vector.load %arg6[%c0_8, %c0_9] : memref<1x192xf32, #tpu.memory_space<vmem>>, vector<1x192xf32>
    %11 = vector.broadcast %10 : vector<1x192xf32> to vector<64x192xf32>
    %12 = arith.addf %9, %11 : vector<64x192xf32>
    %c0_10 = arith.constant 0 : index
    %c0_11 = arith.constant 0 : index
    %13 = vector.load %arg5[%c0_10, %c0_11] : memref<64x192xf32, #tpu.memory_space<vmem>>, vector<64x192xf32>
    %c0_12 = arith.constant 0 : index
    %c0_13 = arith.constant 0 : index
    %14 = vector.load %arg7[%c0_12, %c0_13] : memref<1x64xf32, #tpu.memory_space<vmem>>, vector<1x64xf32>
    %15 = vector.shape_cast %14 : vector<1x64xf32> to vector<1x64xf32>
    %16 = vector.broadcast %15 : vector<1x64xf32> to vector<8x64xf32>
    %cst_14 = arith.constant 0.000000e+00 : f32
    %17 = vector.broadcast %cst_14 : f32 to vector<8x64xf32>
    %18 = vector.extract_strided_slice %12 {offsets = [0, 0], sizes = [8, 192], strides = [1, 1]} : vector<64x192xf32> to vector<8x192xf32>
    %cst_15 = arith.constant dense<0.000000e+00> : vector<8x192xf32>
    %19 = tpu.matmul %17, %13, %cst_15 {dimension_numbers = #tpu.dot_dimension_numbers<[1], [0], [0], [1], [0, 0, 1, 1], [], []>} : vector<8x64xf32>, vector<64x192xf32>, vector<8x192xf32> -> vector<8x192xf32>
    %20 = vector.extract_strided_slice %18 {offsets = [0, 0], sizes = [8, 128], strides = [1, 1]} : vector<8x192xf32> to vector<8x128xf32>
    %21 = vector.extract_strided_slice %19 {offsets = [0, 0], sizes = [8, 128], strides = [1, 1]} : vector<8x192xf32> to vector<8x128xf32>
    %22 = arith.addf %20, %21 : vector<8x128xf32>
    %23 = arith.negf %22 : vector<8x128xf32>
    %24 = math.exp %23 : vector<8x128xf32>
    %cst_16 = arith.constant 1.000000e+00 : f32
    %25 = vector.broadcast %cst_16 : f32 to vector<8x128xf32>
    %26 = arith.addf %25, %24 : vector<8x128xf32>
    %27 = arith.divf %25, %26 : vector<8x128xf32>
    %28 = vector.extract_strided_slice %27 {offsets = [0, 0], sizes = [8, 64], strides = [1, 1]} : vector<8x128xf32> to vector<8x64xf32>
    %29 = vector.extract_strided_slice %27 {offsets = [0, 64], sizes = [8, 64], strides = [1, 1]} : vector<8x128xf32> to vector<8x64xf32>
    %30 = vector.extract_strided_slice %18 {offsets = [0, 128], sizes = [8, 64], strides = [1, 1]} : vector<8x192xf32> to vector<8x64xf32>
    %31 = vector.extract_strided_slice %19 {offsets = [0, 128], sizes = [8, 64], strides = [1, 1]} : vector<8x192xf32> to vector<8x64xf32>
    %32 = arith.addf %31, %16 : vector<8x64xf32>
    %33 = arith.mulf %28, %32 : vector<8x64xf32>
    %34 = arith.addf %30, %33 : vector<8x64xf32>
    %35 = math.tanh %34 : vector<8x64xf32>
    %cst_17 = arith.constant 1.000000e+00 : f32
    %36 = vector.broadcast %cst_17 : f32 to vector<8x64xf32>
    %37 = arith.subf %36, %29 : vector<8x64xf32>
    %38 = arith.mulf %37, %35 : vector<8x64xf32>
    %39 = arith.mulf %29, %17 : vector<8x64xf32>
    %40 = arith.addf %38, %39 : vector<8x64xf32>
    %41 = vector.extract_strided_slice %12 {offsets = [8, 0], sizes = [8, 192], strides = [1, 1]} : vector<64x192xf32> to vector<8x192xf32>
    %cst_18 = arith.constant dense<0.000000e+00> : vector<8x192xf32>
    %42 = tpu.matmul %40, %13, %cst_18 {dimension_numbers = #tpu.dot_dimension_numbers<[1], [0], [0], [1], [0, 0, 1, 1], [], []>} : vector<8x64xf32>, vector<64x192xf32>, vector<8x192xf32> -> vector<8x192xf32>
    %43 = vector.extract_strided_slice %41 {offsets = [0, 0], sizes = [8, 128], strides = [1, 1]} : vector<8x192xf32> to vector<8x128xf32>
    %44 = vector.extract_strided_slice %42 {offsets = [0, 0], sizes = [8, 128], strides = [1, 1]} : vector<8x192xf32> to vector<8x128xf32>
    %45 = arith.addf %43, %44 : vector<8x128xf32>
    %46 = arith.negf %45 : vector<8x128xf32>
    %47 = math.exp %46 : vector<8x128xf32>
    %cst_19 = arith.constant 1.000000e+00 : f32
    %48 = vector.broadcast %cst_19 : f32 to vector<8x128xf32>
    %49 = arith.addf %48, %47 : vector<8x128xf32>
    %50 = arith.divf %48, %49 : vector<8x128xf32>
    %51 = vector.extract_strided_slice %50 {offsets = [0, 0], sizes = [8, 64], strides = [1, 1]} : vector<8x128xf32> to vector<8x64xf32>
    %52 = vector.extract_strided_slice %50 {offsets = [0, 64], sizes = [8, 64], strides = [1, 1]} : vector<8x128xf32> to vector<8x64xf32>
    %53 = vector.extract_strided_slice %41 {offsets = [0, 128], sizes = [8, 64], strides = [1, 1]} : vector<8x192xf32> to vector<8x64xf32>
    %54 = vector.extract_strided_slice %42 {offsets = [0, 128], sizes = [8, 64], strides = [1, 1]} : vector<8x192xf32> to vector<8x64xf32>
    %55 = arith.addf %54, %16 : vector<8x64xf32>
    %56 = arith.mulf %51, %55 : vector<8x64xf32>
    %57 = arith.addf %53, %56 : vector<8x64xf32>
    %58 = math.tanh %57 : vector<8x64xf32>
    %cst_20 = arith.constant 1.000000e+00 : f32
    %59 = vector.broadcast %cst_20 : f32 to vector<8x64xf32>
    %60 = arith.subf %59, %52 : vector<8x64xf32>
    %61 = arith.mulf %60, %58 : vector<8x64xf32>
    %62 = arith.mulf %52, %40 : vector<8x64xf32>
    %63 = arith.addf %61, %62 : vector<8x64xf32>
    %64 = vector.extract_strided_slice %12 {offsets = [16, 0], sizes = [8, 192], strides = [1, 1]} : vector<64x192xf32> to vector<8x192xf32>
    %cst_21 = arith.constant dense<0.000000e+00> : vector<8x192xf32>
    %65 = tpu.matmul %63, %13, %cst_21 {dimension_numbers = #tpu.dot_dimension_numbers<[1], [0], [0], [1], [0, 0, 1, 1], [], []>} : vector<8x64xf32>, vector<64x192xf32>, vector<8x192xf32> -> vector<8x192xf32>
    %66 = vector.extract_strided_slice %64 {offsets = [0, 0], sizes = [8, 128], strides = [1, 1]} : vector<8x192xf32> to vector<8x128xf32>
    %67 = vector.extract_strided_slice %65 {offsets = [0, 0], sizes = [8, 128], strides = [1, 1]} : vector<8x192xf32> to vector<8x128xf32>
    %68 = arith.addf %66, %67 : vector<8x128xf32>
    %69 = arith.negf %68 : vector<8x128xf32>
    %70 = math.exp %69 : vector<8x128xf32>
    %cst_22 = arith.constant 1.000000e+00 : f32
    %71 = vector.broadcast %cst_22 : f32 to vector<8x128xf32>
    %72 = arith.addf %71, %70 : vector<8x128xf32>
    %73 = arith.divf %71, %72 : vector<8x128xf32>
    %74 = vector.extract_strided_slice %73 {offsets = [0, 0], sizes = [8, 64], strides = [1, 1]} : vector<8x128xf32> to vector<8x64xf32>
    %75 = vector.extract_strided_slice %73 {offsets = [0, 64], sizes = [8, 64], strides = [1, 1]} : vector<8x128xf32> to vector<8x64xf32>
    %76 = vector.extract_strided_slice %64 {offsets = [0, 128], sizes = [8, 64], strides = [1, 1]} : vector<8x192xf32> to vector<8x64xf32>
    %77 = vector.extract_strided_slice %65 {offsets = [0, 128], sizes = [8, 64], strides = [1, 1]} : vector<8x192xf32> to vector<8x64xf32>
    %78 = arith.addf %77, %16 : vector<8x64xf32>
    %79 = arith.mulf %74, %78 : vector<8x64xf32>
    %80 = arith.addf %76, %79 : vector<8x64xf32>
    %81 = math.tanh %80 : vector<8x64xf32>
    %cst_23 = arith.constant 1.000000e+00 : f32
    %82 = vector.broadcast %cst_23 : f32 to vector<8x64xf32>
    %83 = arith.subf %82, %75 : vector<8x64xf32>
    %84 = arith.mulf %83, %81 : vector<8x64xf32>
    %85 = arith.mulf %75, %63 : vector<8x64xf32>
    %86 = arith.addf %84, %85 : vector<8x64xf32>
    %87 = vector.extract_strided_slice %12 {offsets = [24, 0], sizes = [8, 192], strides = [1, 1]} : vector<64x192xf32> to vector<8x192xf32>
    %cst_24 = arith.constant dense<0.000000e+00> : vector<8x192xf32>
    %88 = tpu.matmul %86, %13, %cst_24 {dimension_numbers = #tpu.dot_dimension_numbers<[1], [0], [0], [1], [0, 0, 1, 1], [], []>} : vector<8x64xf32>, vector<64x192xf32>, vector<8x192xf32> -> vector<8x192xf32>
    %89 = vector.extract_strided_slice %87 {offsets = [0, 0], sizes = [8, 128], strides = [1, 1]} : vector<8x192xf32> to vector<8x128xf32>
    %90 = vector.extract_strided_slice %88 {offsets = [0, 0], sizes = [8, 128], strides = [1, 1]} : vector<8x192xf32> to vector<8x128xf32>
    %91 = arith.addf %89, %90 : vector<8x128xf32>
    %92 = arith.negf %91 : vector<8x128xf32>
    %93 = math.exp %92 : vector<8x128xf32>
    %cst_25 = arith.constant 1.000000e+00 : f32
    %94 = vector.broadcast %cst_25 : f32 to vector<8x128xf32>
    %95 = arith.addf %94, %93 : vector<8x128xf32>
    %96 = arith.divf %94, %95 : vector<8x128xf32>
    %97 = vector.extract_strided_slice %96 {offsets = [0, 0], sizes = [8, 64], strides = [1, 1]} : vector<8x128xf32> to vector<8x64xf32>
    %98 = vector.extract_strided_slice %96 {offsets = [0, 64], sizes = [8, 64], strides = [1, 1]} : vector<8x128xf32> to vector<8x64xf32>
    %99 = vector.extract_strided_slice %87 {offsets = [0, 128], sizes = [8, 64], strides = [1, 1]} : vector<8x192xf32> to vector<8x64xf32>
    %100 = vector.extract_strided_slice %88 {offsets = [0, 128], sizes = [8, 64], strides = [1, 1]} : vector<8x192xf32> to vector<8x64xf32>
    %101 = arith.addf %100, %16 : vector<8x64xf32>
    %102 = arith.mulf %97, %101 : vector<8x64xf32>
    %103 = arith.addf %99, %102 : vector<8x64xf32>
    %104 = math.tanh %103 : vector<8x64xf32>
    %cst_26 = arith.constant 1.000000e+00 : f32
    %105 = vector.broadcast %cst_26 : f32 to vector<8x64xf32>
    %106 = arith.subf %105, %98 : vector<8x64xf32>
    %107 = arith.mulf %106, %104 : vector<8x64xf32>
    %108 = arith.mulf %98, %86 : vector<8x64xf32>
    %109 = arith.addf %107, %108 : vector<8x64xf32>
    %110 = vector.extract_strided_slice %12 {offsets = [32, 0], sizes = [8, 192], strides = [1, 1]} : vector<64x192xf32> to vector<8x192xf32>
    %cst_27 = arith.constant dense<0.000000e+00> : vector<8x192xf32>
    %111 = tpu.matmul %109, %13, %cst_27 {dimension_numbers = #tpu.dot_dimension_numbers<[1], [0], [0], [1], [0, 0, 1, 1], [], []>} : vector<8x64xf32>, vector<64x192xf32>, vector<8x192xf32> -> vector<8x192xf32>
    %112 = vector.extract_strided_slice %110 {offsets = [0, 0], sizes = [8, 128], strides = [1, 1]} : vector<8x192xf32> to vector<8x128xf32>
    %113 = vector.extract_strided_slice %111 {offsets = [0, 0], sizes = [8, 128], strides = [1, 1]} : vector<8x192xf32> to vector<8x128xf32>
    %114 = arith.addf %112, %113 : vector<8x128xf32>
    %115 = arith.negf %114 : vector<8x128xf32>
    %116 = math.exp %115 : vector<8x128xf32>
    %cst_28 = arith.constant 1.000000e+00 : f32
    %117 = vector.broadcast %cst_28 : f32 to vector<8x128xf32>
    %118 = arith.addf %117, %116 : vector<8x128xf32>
    %119 = arith.divf %117, %118 : vector<8x128xf32>
    %120 = vector.extract_strided_slice %119 {offsets = [0, 0], sizes = [8, 64], strides = [1, 1]} : vector<8x128xf32> to vector<8x64xf32>
    %121 = vector.extract_strided_slice %119 {offsets = [0, 64], sizes = [8, 64], strides = [1, 1]} : vector<8x128xf32> to vector<8x64xf32>
    %122 = vector.extract_strided_slice %110 {offsets = [0, 128], sizes = [8, 64], strides = [1, 1]} : vector<8x192xf32> to vector<8x64xf32>
    %123 = vector.extract_strided_slice %111 {offsets = [0, 128], sizes = [8, 64], strides = [1, 1]} : vector<8x192xf32> to vector<8x64xf32>
    %124 = arith.addf %123, %16 : vector<8x64xf32>
    %125 = arith.mulf %120, %124 : vector<8x64xf32>
    %126 = arith.addf %122, %125 : vector<8x64xf32>
    %127 = math.tanh %126 : vector<8x64xf32>
    %cst_29 = arith.constant 1.000000e+00 : f32
    %128 = vector.broadcast %cst_29 : f32 to vector<8x64xf32>
    %129 = arith.subf %128, %121 : vector<8x64xf32>
    %130 = arith.mulf %129, %127 : vector<8x64xf32>
    %131 = arith.mulf %121, %109 : vector<8x64xf32>
    %132 = arith.addf %130, %131 : vector<8x64xf32>
    %133 = vector.extract_strided_slice %12 {offsets = [40, 0], sizes = [8, 192], strides = [1, 1]} : vector<64x192xf32> to vector<8x192xf32>
    %cst_30 = arith.constant dense<0.000000e+00> : vector<8x192xf32>
    %134 = tpu.matmul %132, %13, %cst_30 {dimension_numbers = #tpu.dot_dimension_numbers<[1], [0], [0], [1], [0, 0, 1, 1], [], []>} : vector<8x64xf32>, vector<64x192xf32>, vector<8x192xf32> -> vector<8x192xf32>
    %135 = vector.extract_strided_slice %133 {offsets = [0, 0], sizes = [8, 128], strides = [1, 1]} : vector<8x192xf32> to vector<8x128xf32>
    %136 = vector.extract_strided_slice %134 {offsets = [0, 0], sizes = [8, 128], strides = [1, 1]} : vector<8x192xf32> to vector<8x128xf32>
    %137 = arith.addf %135, %136 : vector<8x128xf32>
    %138 = arith.negf %137 : vector<8x128xf32>
    %139 = math.exp %138 : vector<8x128xf32>
    %cst_31 = arith.constant 1.000000e+00 : f32
    %140 = vector.broadcast %cst_31 : f32 to vector<8x128xf32>
    %141 = arith.addf %140, %139 : vector<8x128xf32>
    %142 = arith.divf %140, %141 : vector<8x128xf32>
    %143 = vector.extract_strided_slice %142 {offsets = [0, 0], sizes = [8, 64], strides = [1, 1]} : vector<8x128xf32> to vector<8x64xf32>
    %144 = vector.extract_strided_slice %142 {offsets = [0, 64], sizes = [8, 64], strides = [1, 1]} : vector<8x128xf32> to vector<8x64xf32>
    %145 = vector.extract_strided_slice %133 {offsets = [0, 128], sizes = [8, 64], strides = [1, 1]} : vector<8x192xf32> to vector<8x64xf32>
    %146 = vector.extract_strided_slice %134 {offsets = [0, 128], sizes = [8, 64], strides = [1, 1]} : vector<8x192xf32> to vector<8x64xf32>
    %147 = arith.addf %146, %16 : vector<8x64xf32>
    %148 = arith.mulf %143, %147 : vector<8x64xf32>
    %149 = arith.addf %145, %148 : vector<8x64xf32>
    %150 = math.tanh %149 : vector<8x64xf32>
    %cst_32 = arith.constant 1.000000e+00 : f32
    %151 = vector.broadcast %cst_32 : f32 to vector<8x64xf32>
    %152 = arith.subf %151, %144 : vector<8x64xf32>
    %153 = arith.mulf %152, %150 : vector<8x64xf32>
    %154 = arith.mulf %144, %132 : vector<8x64xf32>
    %155 = arith.addf %153, %154 : vector<8x64xf32>
    %156 = vector.extract_strided_slice %12 {offsets = [48, 0], sizes = [8, 192], strides = [1, 1]} : vector<64x192xf32> to vector<8x192xf32>
    %cst_33 = arith.constant dense<0.000000e+00> : vector<8x192xf32>
    %157 = tpu.matmul %155, %13, %cst_33 {dimension_numbers = #tpu.dot_dimension_numbers<[1], [0], [0], [1], [0, 0, 1, 1], [], []>} : vector<8x64xf32>, vector<64x192xf32>, vector<8x192xf32> -> vector<8x192xf32>
    %158 = vector.extract_strided_slice %156 {offsets = [0, 0], sizes = [8, 128], strides = [1, 1]} : vector<8x192xf32> to vector<8x128xf32>
    %159 = vector.extract_strided_slice %157 {offsets = [0, 0], sizes = [8, 128], strides = [1, 1]} : vector<8x192xf32> to vector<8x128xf32>
    %160 = arith.addf %158, %159 : vector<8x128xf32>
    %161 = arith.negf %160 : vector<8x128xf32>
    %162 = math.exp %161 : vector<8x128xf32>
    %cst_34 = arith.constant 1.000000e+00 : f32
    %163 = vector.broadcast %cst_34 : f32 to vector<8x128xf32>
    %164 = arith.addf %163, %162 : vector<8x128xf32>
    %165 = arith.divf %163, %164 : vector<8x128xf32>
    %166 = vector.extract_strided_slice %165 {offsets = [0, 0], sizes = [8, 64], strides = [1, 1]} : vector<8x128xf32> to vector<8x64xf32>
    %167 = vector.extract_strided_slice %165 {offsets = [0, 64], sizes = [8, 64], strides = [1, 1]} : vector<8x128xf32> to vector<8x64xf32>
    %168 = vector.extract_strided_slice %156 {offsets = [0, 128], sizes = [8, 64], strides = [1, 1]} : vector<8x192xf32> to vector<8x64xf32>
    %169 = vector.extract_strided_slice %157 {offsets = [0, 128], sizes = [8, 64], strides = [1, 1]} : vector<8x192xf32> to vector<8x64xf32>
    %170 = arith.addf %169, %16 : vector<8x64xf32>
    %171 = arith.mulf %166, %170 : vector<8x64xf32>
    %172 = arith.addf %168, %171 : vector<8x64xf32>
    %173 = math.tanh %172 : vector<8x64xf32>
    %cst_35 = arith.constant 1.000000e+00 : f32
    %174 = vector.broadcast %cst_35 : f32 to vector<8x64xf32>
    %175 = arith.subf %174, %167 : vector<8x64xf32>
    %176 = arith.mulf %175, %173 : vector<8x64xf32>
    %177 = arith.mulf %167, %155 : vector<8x64xf32>
    %178 = arith.addf %176, %177 : vector<8x64xf32>
    %179 = vector.extract_strided_slice %12 {offsets = [56, 0], sizes = [8, 192], strides = [1, 1]} : vector<64x192xf32> to vector<8x192xf32>
    %cst_36 = arith.constant dense<0.000000e+00> : vector<8x192xf32>
    %180 = tpu.matmul %178, %13, %cst_36 {dimension_numbers = #tpu.dot_dimension_numbers<[1], [0], [0], [1], [0, 0, 1, 1], [], []>} : vector<8x64xf32>, vector<64x192xf32>, vector<8x192xf32> -> vector<8x192xf32>
    %181 = vector.extract_strided_slice %179 {offsets = [0, 0], sizes = [8, 128], strides = [1, 1]} : vector<8x192xf32> to vector<8x128xf32>
    %182 = vector.extract_strided_slice %180 {offsets = [0, 0], sizes = [8, 128], strides = [1, 1]} : vector<8x192xf32> to vector<8x128xf32>
    %183 = arith.addf %181, %182 : vector<8x128xf32>
    %184 = arith.negf %183 : vector<8x128xf32>
    %185 = math.exp %184 : vector<8x128xf32>
    %cst_37 = arith.constant 1.000000e+00 : f32
    %186 = vector.broadcast %cst_37 : f32 to vector<8x128xf32>
    %187 = arith.addf %186, %185 : vector<8x128xf32>
    %188 = arith.divf %186, %187 : vector<8x128xf32>
    %189 = vector.extract_strided_slice %188 {offsets = [0, 0], sizes = [8, 64], strides = [1, 1]} : vector<8x128xf32> to vector<8x64xf32>
    %190 = vector.extract_strided_slice %188 {offsets = [0, 64], sizes = [8, 64], strides = [1, 1]} : vector<8x128xf32> to vector<8x64xf32>
    %191 = vector.extract_strided_slice %179 {offsets = [0, 128], sizes = [8, 64], strides = [1, 1]} : vector<8x192xf32> to vector<8x64xf32>
    %192 = vector.extract_strided_slice %180 {offsets = [0, 128], sizes = [8, 64], strides = [1, 1]} : vector<8x192xf32> to vector<8x64xf32>
    %193 = arith.addf %192, %16 : vector<8x64xf32>
    %194 = arith.mulf %189, %193 : vector<8x64xf32>
    %195 = arith.addf %191, %194 : vector<8x64xf32>
    %196 = math.tanh %195 : vector<8x64xf32>
    %cst_38 = arith.constant 1.000000e+00 : f32
    %197 = vector.broadcast %cst_38 : f32 to vector<8x64xf32>
    %198 = arith.subf %197, %190 : vector<8x64xf32>
    %199 = arith.mulf %198, %196 : vector<8x64xf32>
    %200 = arith.mulf %190, %178 : vector<8x64xf32>
    %201 = arith.addf %199, %200 : vector<8x64xf32>
    %202 = vector.extract_strided_slice %201 {offsets = [0, 0], sizes = [8, 32], strides = [1, 1]} : vector<8x64xf32> to vector<8x32xf32>
    %203 = vector.extract_strided_slice %201 {offsets = [0, 32], sizes = [8, 32], strides = [1, 1]} : vector<8x64xf32> to vector<8x32xf32>
    %204 = arith.select %2, %40, %201 : vector<8x64xi1>, vector<8x64xf32>
    %205 = arith.select %2, %63, %178 : vector<8x64xi1>, vector<8x64xf32>
    %206 = arith.select %2, %86, %155 : vector<8x64xi1>, vector<8x64xf32>
    %207 = arith.select %2, %109, %132 : vector<8x64xi1>, vector<8x64xf32>
    %208 = arith.select %2, %132, %109 : vector<8x64xi1>, vector<8x64xf32>
    %209 = arith.select %2, %155, %86 : vector<8x64xi1>, vector<8x64xf32>
    %210 = arith.select %2, %178, %63 : vector<8x64xi1>, vector<8x64xf32>
    %211 = arith.select %2, %201, %40 : vector<8x64xi1>, vector<8x64xf32>
    %212 = tpu.concatenate %204, %205, %206, %207, %208, %209, %210, %211 in 0 : vector<8x64xf32>, vector<8x64xf32>, vector<8x64xf32>, vector<8x64xf32>, vector<8x64xf32>, vector<8x64xf32>, vector<8x64xf32>, vector<8x64xf32> -> vector<64x64xf32>
    %213 = tpu.concatenate %211, %210, %209, %208, %207, %206, %205, %204 in 0 : vector<8x64xf32>, vector<8x64xf32>, vector<8x64xf32>, vector<8x64xf32>, vector<8x64xf32>, vector<8x64xf32>, vector<8x64xf32>, vector<8x64xf32> -> vector<64x64xf32>
    %c0_39 = arith.constant 0 : index
    %c0_40 = arith.constant 0 : index
    %214 = vector.load %arg8[%c0_39, %c0_40] : memref<64x192xf32, #tpu.memory_space<vmem>>, vector<64x192xf32>
    %cst_41 = arith.constant dense<0.000000e+00> : vector<64x192xf32>
    %215 = tpu.matmul %212, %214, %cst_41 {dimension_numbers = #tpu.dot_dimension_numbers<[1], [0], [0], [1], [0, 0, 1, 1], [], []>} : vector<64x64xf32>, vector<64x192xf32>, vector<64x192xf32> -> vector<64x192xf32>
    %c0_42 = arith.constant 0 : index
    %c0_43 = arith.constant 0 : index
    %216 = vector.load %arg9[%c0_42, %c0_43] : memref<64x192xf32, #tpu.memory_space<vmem>>, vector<64x192xf32>
    %cst_44 = arith.constant dense<0.000000e+00> : vector<64x192xf32>
    %217 = tpu.matmul %213, %216, %cst_44 {dimension_numbers = #tpu.dot_dimension_numbers<[1], [0], [0], [1], [0, 0, 1, 1], [], []>} : vector<64x64xf32>, vector<64x192xf32>, vector<64x192xf32> -> vector<64x192xf32>
    %218 = arith.addf %215, %217 : vector<64x192xf32>
    %c0_45 = arith.constant 0 : index
    %c0_46 = arith.constant 0 : index
    %219 = vector.load %arg11[%c0_45, %c0_46] : memref<1x192xf32, #tpu.memory_space<vmem>>, vector<1x192xf32>
    %220 = vector.broadcast %219 : vector<1x192xf32> to vector<64x192xf32>
    %221 = arith.addf %218, %220 : vector<64x192xf32>
    %c0_47 = arith.constant 0 : index
    %c0_48 = arith.constant 0 : index
    %222 = vector.load %arg10[%c0_47, %c0_48] : memref<64x192xf32, #tpu.memory_space<vmem>>, vector<64x192xf32>
    %c0_49 = arith.constant 0 : index
    %c0_50 = arith.constant 0 : index
    %223 = vector.load %arg12[%c0_49, %c0_50] : memref<1x64xf32, #tpu.memory_space<vmem>>, vector<1x64xf32>
    %224 = vector.shape_cast %223 : vector<1x64xf32> to vector<1x64xf32>
    %225 = vector.broadcast %224 : vector<1x64xf32> to vector<8x64xf32>
    %cst_51 = arith.constant 0.000000e+00 : f32
    %226 = vector.broadcast %cst_51 : f32 to vector<8x64xf32>
    %227 = vector.extract_strided_slice %221 {offsets = [0, 0], sizes = [8, 192], strides = [1, 1]} : vector<64x192xf32> to vector<8x192xf32>
    %cst_52 = arith.constant dense<0.000000e+00> : vector<8x192xf32>
    %228 = tpu.matmul %226, %222, %cst_52 {dimension_numbers = #tpu.dot_dimension_numbers<[1], [0], [0], [1], [0, 0, 1, 1], [], []>} : vector<8x64xf32>, vector<64x192xf32>, vector<8x192xf32> -> vector<8x192xf32>
    %229 = vector.extract_strided_slice %227 {offsets = [0, 0], sizes = [8, 128], strides = [1, 1]} : vector<8x192xf32> to vector<8x128xf32>
    %230 = vector.extract_strided_slice %228 {offsets = [0, 0], sizes = [8, 128], strides = [1, 1]} : vector<8x192xf32> to vector<8x128xf32>
    %231 = arith.addf %229, %230 : vector<8x128xf32>
    %232 = arith.negf %231 : vector<8x128xf32>
    %233 = math.exp %232 : vector<8x128xf32>
    %cst_53 = arith.constant 1.000000e+00 : f32
    %234 = vector.broadcast %cst_53 : f32 to vector<8x128xf32>
    %235 = arith.addf %234, %233 : vector<8x128xf32>
    %236 = arith.divf %234, %235 : vector<8x128xf32>
    %237 = vector.extract_strided_slice %236 {offsets = [0, 0], sizes = [8, 64], strides = [1, 1]} : vector<8x128xf32> to vector<8x64xf32>
    %238 = vector.extract_strided_slice %236 {offsets = [0, 64], sizes = [8, 64], strides = [1, 1]} : vector<8x128xf32> to vector<8x64xf32>
    %239 = vector.extract_strided_slice %227 {offsets = [0, 128], sizes = [8, 64], strides = [1, 1]} : vector<8x192xf32> to vector<8x64xf32>
    %240 = vector.extract_strided_slice %228 {offsets = [0, 128], sizes = [8, 64], strides = [1, 1]} : vector<8x192xf32> to vector<8x64xf32>
    %241 = arith.addf %240, %225 : vector<8x64xf32>
    %242 = arith.mulf %237, %241 : vector<8x64xf32>
    %243 = arith.addf %239, %242 : vector<8x64xf32>
    %244 = math.tanh %243 : vector<8x64xf32>
    %cst_54 = arith.constant 1.000000e+00 : f32
    %245 = vector.broadcast %cst_54 : f32 to vector<8x64xf32>
    %246 = arith.subf %245, %238 : vector<8x64xf32>
    %247 = arith.mulf %246, %244 : vector<8x64xf32>
    %248 = arith.mulf %238, %226 : vector<8x64xf32>
    %249 = arith.addf %247, %248 : vector<8x64xf32>
    %250 = vector.extract_strided_slice %221 {offsets = [8, 0], sizes = [8, 192], strides = [1, 1]} : vector<64x192xf32> to vector<8x192xf32>
    %cst_55 = arith.constant dense<0.000000e+00> : vector<8x192xf32>
    %251 = tpu.matmul %249, %222, %cst_55 {dimension_numbers = #tpu.dot_dimension_numbers<[1], [0], [0], [1], [0, 0, 1, 1], [], []>} : vector<8x64xf32>, vector<64x192xf32>, vector<8x192xf32> -> vector<8x192xf32>
    %252 = vector.extract_strided_slice %250 {offsets = [0, 0], sizes = [8, 128], strides = [1, 1]} : vector<8x192xf32> to vector<8x128xf32>
    %253 = vector.extract_strided_slice %251 {offsets = [0, 0], sizes = [8, 128], strides = [1, 1]} : vector<8x192xf32> to vector<8x128xf32>
    %254 = arith.addf %252, %253 : vector<8x128xf32>
    %255 = arith.negf %254 : vector<8x128xf32>
    %256 = math.exp %255 : vector<8x128xf32>
    %cst_56 = arith.constant 1.000000e+00 : f32
    %257 = vector.broadcast %cst_56 : f32 to vector<8x128xf32>
    %258 = arith.addf %257, %256 : vector<8x128xf32>
    %259 = arith.divf %257, %258 : vector<8x128xf32>
    %260 = vector.extract_strided_slice %259 {offsets = [0, 0], sizes = [8, 64], strides = [1, 1]} : vector<8x128xf32> to vector<8x64xf32>
    %261 = vector.extract_strided_slice %259 {offsets = [0, 64], sizes = [8, 64], strides = [1, 1]} : vector<8x128xf32> to vector<8x64xf32>
    %262 = vector.extract_strided_slice %250 {offsets = [0, 128], sizes = [8, 64], strides = [1, 1]} : vector<8x192xf32> to vector<8x64xf32>
    %263 = vector.extract_strided_slice %251 {offsets = [0, 128], sizes = [8, 64], strides = [1, 1]} : vector<8x192xf32> to vector<8x64xf32>
    %264 = arith.addf %263, %225 : vector<8x64xf32>
    %265 = arith.mulf %260, %264 : vector<8x64xf32>
    %266 = arith.addf %262, %265 : vector<8x64xf32>
    %267 = math.tanh %266 : vector<8x64xf32>
    %cst_57 = arith.constant 1.000000e+00 : f32
    %268 = vector.broadcast %cst_57 : f32 to vector<8x64xf32>
    %269 = arith.subf %268, %261 : vector<8x64xf32>
    %270 = arith.mulf %269, %267 : vector<8x64xf32>
    %271 = arith.mulf %261, %249 : vector<8x64xf32>
    %272 = arith.addf %270, %271 : vector<8x64xf32>
    %273 = vector.extract_strided_slice %221 {offsets = [16, 0], sizes = [8, 192], strides = [1, 1]} : vector<64x192xf32> to vector<8x192xf32>
    %cst_58 = arith.constant dense<0.000000e+00> : vector<8x192xf32>
    %274 = tpu.matmul %272, %222, %cst_58 {dimension_numbers = #tpu.dot_dimension_numbers<[1], [0], [0], [1], [0, 0, 1, 1], [], []>} : vector<8x64xf32>, vector<64x192xf32>, vector<8x192xf32> -> vector<8x192xf32>
    %275 = vector.extract_strided_slice %273 {offsets = [0, 0], sizes = [8, 128], strides = [1, 1]} : vector<8x192xf32> to vector<8x128xf32>
    %276 = vector.extract_strided_slice %274 {offsets = [0, 0], sizes = [8, 128], strides = [1, 1]} : vector<8x192xf32> to vector<8x128xf32>
    %277 = arith.addf %275, %276 : vector<8x128xf32>
    %278 = arith.negf %277 : vector<8x128xf32>
    %279 = math.exp %278 : vector<8x128xf32>
    %cst_59 = arith.constant 1.000000e+00 : f32
    %280 = vector.broadcast %cst_59 : f32 to vector<8x128xf32>
    %281 = arith.addf %280, %279 : vector<8x128xf32>
    %282 = arith.divf %280, %281 : vector<8x128xf32>
    %283 = vector.extract_strided_slice %282 {offsets = [0, 0], sizes = [8, 64], strides = [1, 1]} : vector<8x128xf32> to vector<8x64xf32>
    %284 = vector.extract_strided_slice %282 {offsets = [0, 64], sizes = [8, 64], strides = [1, 1]} : vector<8x128xf32> to vector<8x64xf32>
    %285 = vector.extract_strided_slice %273 {offsets = [0, 128], sizes = [8, 64], strides = [1, 1]} : vector<8x192xf32> to vector<8x64xf32>
    %286 = vector.extract_strided_slice %274 {offsets = [0, 128], sizes = [8, 64], strides = [1, 1]} : vector<8x192xf32> to vector<8x64xf32>
    %287 = arith.addf %286, %225 : vector<8x64xf32>
    %288 = arith.mulf %283, %287 : vector<8x64xf32>
    %289 = arith.addf %285, %288 : vector<8x64xf32>
    %290 = math.tanh %289 : vector<8x64xf32>
    %cst_60 = arith.constant 1.000000e+00 : f32
    %291 = vector.broadcast %cst_60 : f32 to vector<8x64xf32>
    %292 = arith.subf %291, %284 : vector<8x64xf32>
    %293 = arith.mulf %292, %290 : vector<8x64xf32>
    %294 = arith.mulf %284, %272 : vector<8x64xf32>
    %295 = arith.addf %293, %294 : vector<8x64xf32>
    %296 = vector.extract_strided_slice %221 {offsets = [24, 0], sizes = [8, 192], strides = [1, 1]} : vector<64x192xf32> to vector<8x192xf32>
    %cst_61 = arith.constant dense<0.000000e+00> : vector<8x192xf32>
    %297 = tpu.matmul %295, %222, %cst_61 {dimension_numbers = #tpu.dot_dimension_numbers<[1], [0], [0], [1], [0, 0, 1, 1], [], []>} : vector<8x64xf32>, vector<64x192xf32>, vector<8x192xf32> -> vector<8x192xf32>
    %298 = vector.extract_strided_slice %296 {offsets = [0, 0], sizes = [8, 128], strides = [1, 1]} : vector<8x192xf32> to vector<8x128xf32>
    %299 = vector.extract_strided_slice %297 {offsets = [0, 0], sizes = [8, 128], strides = [1, 1]} : vector<8x192xf32> to vector<8x128xf32>
    %300 = arith.addf %298, %299 : vector<8x128xf32>
    %301 = arith.negf %300 : vector<8x128xf32>
    %302 = math.exp %301 : vector<8x128xf32>
    %cst_62 = arith.constant 1.000000e+00 : f32
    %303 = vector.broadcast %cst_62 : f32 to vector<8x128xf32>
    %304 = arith.addf %303, %302 : vector<8x128xf32>
    %305 = arith.divf %303, %304 : vector<8x128xf32>
    %306 = vector.extract_strided_slice %305 {offsets = [0, 0], sizes = [8, 64], strides = [1, 1]} : vector<8x128xf32> to vector<8x64xf32>
    %307 = vector.extract_strided_slice %305 {offsets = [0, 64], sizes = [8, 64], strides = [1, 1]} : vector<8x128xf32> to vector<8x64xf32>
    %308 = vector.extract_strided_slice %296 {offsets = [0, 128], sizes = [8, 64], strides = [1, 1]} : vector<8x192xf32> to vector<8x64xf32>
    %309 = vector.extract_strided_slice %297 {offsets = [0, 128], sizes = [8, 64], strides = [1, 1]} : vector<8x192xf32> to vector<8x64xf32>
    %310 = arith.addf %309, %225 : vector<8x64xf32>
    %311 = arith.mulf %306, %310 : vector<8x64xf32>
    %312 = arith.addf %308, %311 : vector<8x64xf32>
    %313 = math.tanh %312 : vector<8x64xf32>
    %cst_63 = arith.constant 1.000000e+00 : f32
    %314 = vector.broadcast %cst_63 : f32 to vector<8x64xf32>
    %315 = arith.subf %314, %307 : vector<8x64xf32>
    %316 = arith.mulf %315, %313 : vector<8x64xf32>
    %317 = arith.mulf %307, %295 : vector<8x64xf32>
    %318 = arith.addf %316, %317 : vector<8x64xf32>
    %319 = vector.extract_strided_slice %221 {offsets = [32, 0], sizes = [8, 192], strides = [1, 1]} : vector<64x192xf32> to vector<8x192xf32>
    %cst_64 = arith.constant dense<0.000000e+00> : vector<8x192xf32>
    %320 = tpu.matmul %318, %222, %cst_64 {dimension_numbers = #tpu.dot_dimension_numbers<[1], [0], [0], [1], [0, 0, 1, 1], [], []>} : vector<8x64xf32>, vector<64x192xf32>, vector<8x192xf32> -> vector<8x192xf32>
    %321 = vector.extract_strided_slice %319 {offsets = [0, 0], sizes = [8, 128], strides = [1, 1]} : vector<8x192xf32> to vector<8x128xf32>
    %322 = vector.extract_strided_slice %320 {offsets = [0, 0], sizes = [8, 128], strides = [1, 1]} : vector<8x192xf32> to vector<8x128xf32>
    %323 = arith.addf %321, %322 : vector<8x128xf32>
    %324 = arith.negf %323 : vector<8x128xf32>
    %325 = math.exp %324 : vector<8x128xf32>
    %cst_65 = arith.constant 1.000000e+00 : f32
    %326 = vector.broadcast %cst_65 : f32 to vector<8x128xf32>
    %327 = arith.addf %326, %325 : vector<8x128xf32>
    %328 = arith.divf %326, %327 : vector<8x128xf32>
    %329 = vector.extract_strided_slice %328 {offsets = [0, 0], sizes = [8, 64], strides = [1, 1]} : vector<8x128xf32> to vector<8x64xf32>
    %330 = vector.extract_strided_slice %328 {offsets = [0, 64], sizes = [8, 64], strides = [1, 1]} : vector<8x128xf32> to vector<8x64xf32>
    %331 = vector.extract_strided_slice %319 {offsets = [0, 128], sizes = [8, 64], strides = [1, 1]} : vector<8x192xf32> to vector<8x64xf32>
    %332 = vector.extract_strided_slice %320 {offsets = [0, 128], sizes = [8, 64], strides = [1, 1]} : vector<8x192xf32> to vector<8x64xf32>
    %333 = arith.addf %332, %225 : vector<8x64xf32>
    %334 = arith.mulf %329, %333 : vector<8x64xf32>
    %335 = arith.addf %331, %334 : vector<8x64xf32>
    %336 = math.tanh %335 : vector<8x64xf32>
    %cst_66 = arith.constant 1.000000e+00 : f32
    %337 = vector.broadcast %cst_66 : f32 to vector<8x64xf32>
    %338 = arith.subf %337, %330 : vector<8x64xf32>
    %339 = arith.mulf %338, %336 : vector<8x64xf32>
    %340 = arith.mulf %330, %318 : vector<8x64xf32>
    %341 = arith.addf %339, %340 : vector<8x64xf32>
    %342 = vector.extract_strided_slice %221 {offsets = [40, 0], sizes = [8, 192], strides = [1, 1]} : vector<64x192xf32> to vector<8x192xf32>
    %cst_67 = arith.constant dense<0.000000e+00> : vector<8x192xf32>
    %343 = tpu.matmul %341, %222, %cst_67 {dimension_numbers = #tpu.dot_dimension_numbers<[1], [0], [0], [1], [0, 0, 1, 1], [], []>} : vector<8x64xf32>, vector<64x192xf32>, vector<8x192xf32> -> vector<8x192xf32>
    %344 = vector.extract_strided_slice %342 {offsets = [0, 0], sizes = [8, 128], strides = [1, 1]} : vector<8x192xf32> to vector<8x128xf32>
    %345 = vector.extract_strided_slice %343 {offsets = [0, 0], sizes = [8, 128], strides = [1, 1]} : vector<8x192xf32> to vector<8x128xf32>
    %346 = arith.addf %344, %345 : vector<8x128xf32>
    %347 = arith.negf %346 : vector<8x128xf32>
    %348 = math.exp %347 : vector<8x128xf32>
    %cst_68 = arith.constant 1.000000e+00 : f32
    %349 = vector.broadcast %cst_68 : f32 to vector<8x128xf32>
    %350 = arith.addf %349, %348 : vector<8x128xf32>
    %351 = arith.divf %349, %350 : vector<8x128xf32>
    %352 = vector.extract_strided_slice %351 {offsets = [0, 0], sizes = [8, 64], strides = [1, 1]} : vector<8x128xf32> to vector<8x64xf32>
    %353 = vector.extract_strided_slice %351 {offsets = [0, 64], sizes = [8, 64], strides = [1, 1]} : vector<8x128xf32> to vector<8x64xf32>
    %354 = vector.extract_strided_slice %342 {offsets = [0, 128], sizes = [8, 64], strides = [1, 1]} : vector<8x192xf32> to vector<8x64xf32>
    %355 = vector.extract_strided_slice %343 {offsets = [0, 128], sizes = [8, 64], strides = [1, 1]} : vector<8x192xf32> to vector<8x64xf32>
    %356 = arith.addf %355, %225 : vector<8x64xf32>
    %357 = arith.mulf %352, %356 : vector<8x64xf32>
    %358 = arith.addf %354, %357 : vector<8x64xf32>
    %359 = math.tanh %358 : vector<8x64xf32>
    %cst_69 = arith.constant 1.000000e+00 : f32
    %360 = vector.broadcast %cst_69 : f32 to vector<8x64xf32>
    %361 = arith.subf %360, %353 : vector<8x64xf32>
    %362 = arith.mulf %361, %359 : vector<8x64xf32>
    %363 = arith.mulf %353, %341 : vector<8x64xf32>
    %364 = arith.addf %362, %363 : vector<8x64xf32>
    %365 = vector.extract_strided_slice %221 {offsets = [48, 0], sizes = [8, 192], strides = [1, 1]} : vector<64x192xf32> to vector<8x192xf32>
    %cst_70 = arith.constant dense<0.000000e+00> : vector<8x192xf32>
    %366 = tpu.matmul %364, %222, %cst_70 {dimension_numbers = #tpu.dot_dimension_numbers<[1], [0], [0], [1], [0, 0, 1, 1], [], []>} : vector<8x64xf32>, vector<64x192xf32>, vector<8x192xf32> -> vector<8x192xf32>
    %367 = vector.extract_strided_slice %365 {offsets = [0, 0], sizes = [8, 128], strides = [1, 1]} : vector<8x192xf32> to vector<8x128xf32>
    %368 = vector.extract_strided_slice %366 {offsets = [0, 0], sizes = [8, 128], strides = [1, 1]} : vector<8x192xf32> to vector<8x128xf32>
    %369 = arith.addf %367, %368 : vector<8x128xf32>
    %370 = arith.negf %369 : vector<8x128xf32>
    %371 = math.exp %370 : vector<8x128xf32>
    %cst_71 = arith.constant 1.000000e+00 : f32
    %372 = vector.broadcast %cst_71 : f32 to vector<8x128xf32>
    %373 = arith.addf %372, %371 : vector<8x128xf32>
    %374 = arith.divf %372, %373 : vector<8x128xf32>
    %375 = vector.extract_strided_slice %374 {offsets = [0, 0], sizes = [8, 64], strides = [1, 1]} : vector<8x128xf32> to vector<8x64xf32>
    %376 = vector.extract_strided_slice %374 {offsets = [0, 64], sizes = [8, 64], strides = [1, 1]} : vector<8x128xf32> to vector<8x64xf32>
    %377 = vector.extract_strided_slice %365 {offsets = [0, 128], sizes = [8, 64], strides = [1, 1]} : vector<8x192xf32> to vector<8x64xf32>
    %378 = vector.extract_strided_slice %366 {offsets = [0, 128], sizes = [8, 64], strides = [1, 1]} : vector<8x192xf32> to vector<8x64xf32>
    %379 = arith.addf %378, %225 : vector<8x64xf32>
    %380 = arith.mulf %375, %379 : vector<8x64xf32>
    %381 = arith.addf %377, %380 : vector<8x64xf32>
    %382 = math.tanh %381 : vector<8x64xf32>
    %cst_72 = arith.constant 1.000000e+00 : f32
    %383 = vector.broadcast %cst_72 : f32 to vector<8x64xf32>
    %384 = arith.subf %383, %376 : vector<8x64xf32>
    %385 = arith.mulf %384, %382 : vector<8x64xf32>
    %386 = arith.mulf %376, %364 : vector<8x64xf32>
    %387 = arith.addf %385, %386 : vector<8x64xf32>
    %388 = vector.extract_strided_slice %221 {offsets = [56, 0], sizes = [8, 192], strides = [1, 1]} : vector<64x192xf32> to vector<8x192xf32>
    %cst_73 = arith.constant dense<0.000000e+00> : vector<8x192xf32>
    %389 = tpu.matmul %387, %222, %cst_73 {dimension_numbers = #tpu.dot_dimension_numbers<[1], [0], [0], [1], [0, 0, 1, 1], [], []>} : vector<8x64xf32>, vector<64x192xf32>, vector<8x192xf32> -> vector<8x192xf32>
    %390 = vector.extract_strided_slice %388 {offsets = [0, 0], sizes = [8, 128], strides = [1, 1]} : vector<8x192xf32> to vector<8x128xf32>
    %391 = vector.extract_strided_slice %389 {offsets = [0, 0], sizes = [8, 128], strides = [1, 1]} : vector<8x192xf32> to vector<8x128xf32>
    %392 = arith.addf %390, %391 : vector<8x128xf32>
    %393 = arith.negf %392 : vector<8x128xf32>
    %394 = math.exp %393 : vector<8x128xf32>
    %cst_74 = arith.constant 1.000000e+00 : f32
    %395 = vector.broadcast %cst_74 : f32 to vector<8x128xf32>
    %396 = arith.addf %395, %394 : vector<8x128xf32>
    %397 = arith.divf %395, %396 : vector<8x128xf32>
    %398 = vector.extract_strided_slice %397 {offsets = [0, 0], sizes = [8, 64], strides = [1, 1]} : vector<8x128xf32> to vector<8x64xf32>
    %399 = vector.extract_strided_slice %397 {offsets = [0, 64], sizes = [8, 64], strides = [1, 1]} : vector<8x128xf32> to vector<8x64xf32>
    %400 = vector.extract_strided_slice %388 {offsets = [0, 128], sizes = [8, 64], strides = [1, 1]} : vector<8x192xf32> to vector<8x64xf32>
    %401 = vector.extract_strided_slice %389 {offsets = [0, 128], sizes = [8, 64], strides = [1, 1]} : vector<8x192xf32> to vector<8x64xf32>
    %402 = arith.addf %401, %225 : vector<8x64xf32>
    %403 = arith.mulf %398, %402 : vector<8x64xf32>
    %404 = arith.addf %400, %403 : vector<8x64xf32>
    %405 = math.tanh %404 : vector<8x64xf32>
    %cst_75 = arith.constant 1.000000e+00 : f32
    %406 = vector.broadcast %cst_75 : f32 to vector<8x64xf32>
    %407 = arith.subf %406, %399 : vector<8x64xf32>
    %408 = arith.mulf %407, %405 : vector<8x64xf32>
    %409 = arith.mulf %399, %387 : vector<8x64xf32>
    %410 = arith.addf %408, %409 : vector<8x64xf32>
    %411 = vector.extract_strided_slice %410 {offsets = [0, 0], sizes = [8, 32], strides = [1, 1]} : vector<8x64xf32> to vector<8x32xf32>
    %412 = vector.extract_strided_slice %410 {offsets = [0, 32], sizes = [8, 32], strides = [1, 1]} : vector<8x64xf32> to vector<8x32xf32>
    %413 = arith.select %2, %249, %410 : vector<8x64xi1>, vector<8x64xf32>
    %414 = arith.select %2, %272, %387 : vector<8x64xi1>, vector<8x64xf32>
    %415 = arith.select %2, %295, %364 : vector<8x64xi1>, vector<8x64xf32>
    %416 = arith.select %2, %318, %341 : vector<8x64xi1>, vector<8x64xf32>
    %417 = arith.select %2, %341, %318 : vector<8x64xi1>, vector<8x64xf32>
    %418 = arith.select %2, %364, %295 : vector<8x64xi1>, vector<8x64xf32>
    %419 = arith.select %2, %387, %272 : vector<8x64xi1>, vector<8x64xf32>
    %420 = arith.select %2, %410, %249 : vector<8x64xi1>, vector<8x64xf32>
    %421 = tpu.concatenate %413, %414, %415, %416, %417, %418, %419, %420 in 0 : vector<8x64xf32>, vector<8x64xf32>, vector<8x64xf32>, vector<8x64xf32>, vector<8x64xf32>, vector<8x64xf32>, vector<8x64xf32>, vector<8x64xf32> -> vector<64x64xf32>
    %c0_76 = arith.constant 0 : index
    %c0_77 = arith.constant 0 : index
    %422 = vector.load %arg17[%c0_76, %c0_77] : memref<64x64xf32, #tpu.memory_space<vmem>>, vector<64x64xf32>
    tpu.vector_store %arg17[%c0_76, %c0_77], %421 {strides = array<i32>} : memref<64x64xf32, #tpu.memory_space<vmem>>, vector<64x64xf32>,
    %423 = tpu.concatenate %202, %203 in 0 : vector<8x32xf32>, vector<8x32xf32> -> vector<16x32xf32>
    %424 = tpu.concatenate %411, %412 in 0 : vector<8x32xf32>, vector<8x32xf32> -> vector<16x32xf32>
    %c0_78 = arith.constant 0 : index
    %c0_79 = arith.constant 0 : index
    %425 = vector.load %arg13[%c0_78, %c0_79] : memref<64x32xf32, #tpu.memory_space<vmem>>, vector<32x32xf32>
    %cst_80 = arith.constant dense<0.000000e+00> : vector<16x32xf32>
    %426 = tpu.matmul %423, %425, %cst_80 {dimension_numbers = #tpu.dot_dimension_numbers<[1], [0], [0], [1], [0, 0, 1, 1], [], []>} : vector<16x32xf32>, vector<32x32xf32>, vector<16x32xf32> -> vector<16x32xf32>
    %c32 = arith.constant 32 : index
    %c0_81 = arith.constant 0 : index
    %427 = vector.load %arg13[%c32, %c0_81] : memref<64x32xf32, #tpu.memory_space<vmem>>, vector<32x32xf32>
    %cst_82 = arith.constant dense<0.000000e+00> : vector<16x32xf32>
    %428 = tpu.matmul %424, %427, %cst_82 {dimension_numbers = #tpu.dot_dimension_numbers<[1], [0], [0], [1], [0, 0, 1, 1], [], []>} : vector<16x32xf32>, vector<32x32xf32>, vector<16x32xf32> -> vector<16x32xf32>
    %429 = arith.addf %426, %428 : vector<16x32xf32>
    %c0_83 = arith.constant 0 : index
    %c0_84 = arith.constant 0 : index
    %430 = vector.load %arg14[%c0_83, %c0_84] : memref<1x32xf32, #tpu.memory_space<vmem>>, vector<1x32xf32>
    %431 = vector.broadcast %430 : vector<1x32xf32> to vector<16x32xf32>
    %432 = arith.addf %429, %431 : vector<16x32xf32>
    %cst_85 = arith.constant dense<0.000000e+00> : vector<16xf32>
    %433 = vector.multi_reduction <add>, %432, %cst_85 [1] : vector<16x32xf32> to vector<16xf32>
    %434 = vector.shape_cast %433 : vector<16xf32> to vector<16x1xf32>
    %cst_86 = arith.constant 3.200000e+01 : f32
    %435 = vector.broadcast %cst_86 : f32 to vector<16x1xf32>
    %436 = arith.divf %434, %435 : vector<16x1xf32>
    %437 = vector.broadcast %436 : vector<16x1xf32> to vector<16x32xf32>
    %438 = arith.subf %432, %437 : vector<16x32xf32>
    %439 = arith.mulf %438, %438 : vector<16x32xf32>
    %cst_87 = arith.constant dense<0.000000e+00> : vector<16xf32>
    %440 = vector.multi_reduction <add>, %439, %cst_87 [1] : vector<16x32xf32> to vector<16xf32>
    %441 = vector.shape_cast %440 : vector<16xf32> to vector<16x1xf32>
    %cst_88 = arith.constant 3.200000e+01 : f32
    %442 = vector.broadcast %cst_88 : f32 to vector<16x1xf32>
    %443 = arith.divf %441, %442 : vector<16x1xf32>
    %444 = vector.broadcast %436 : vector<16x1xf32> to vector<16x32xf32>
    %445 = arith.subf %432, %444 : vector<16x32xf32>
    %cst_89 = arith.constant 9.99999974E-6 : f32
    %446 = vector.broadcast %cst_89 : f32 to vector<16x1xf32>
    %447 = arith.addf %443, %446 : vector<16x1xf32>
    %448 = math.rsqrt %447 : vector<16x1xf32>
    %449 = vector.broadcast %448 : vector<16x1xf32> to vector<16x32xf32>
    %450 = arith.mulf %445, %449 : vector<16x32xf32>
    %c0_90 = arith.constant 0 : index
    %c0_91 = arith.constant 0 : index
    %451 = vector.load %arg15[%c0_90, %c0_91] : memref<1x32xf32, #tpu.memory_space<vmem>>, vector<1x32xf32>
    %452 = vector.broadcast %451 : vector<1x32xf32> to vector<16x32xf32>
    %453 = arith.mulf %450, %452 : vector<16x32xf32>
    %c0_92 = arith.constant 0 : index
    %c0_93 = arith.constant 0 : index
    %454 = vector.load %arg16[%c0_92, %c0_93] : memref<1x32xf32, #tpu.memory_space<vmem>>, vector<1x32xf32>
    %455 = vector.broadcast %454 : vector<1x32xf32> to vector<16x32xf32>
    %456 = arith.addf %453, %455 : vector<16x32xf32>
    %c0_94 = arith.constant 0 : index
    %c0_95 = arith.constant 0 : index
    %457 = vector.load %arg18[%c0_94, %c0_95] : memref<16x32xf32, #tpu.memory_space<vmem>>, vector<16x32xf32>
    tpu.vector_store %arg18[%c0_94, %c0_95], %456 {strides = array<i32>} : memref<16x32xf32, #tpu.memory_space<vmem>>, vector<16x32xf32>,
    return
  }
  func.func @transform_0(%arg0: i32) -> (i32, i32) {
    %c0_i32 = arith.constant 0 : i32
    %c0_i32_0 = arith.constant 0 : i32
    %c0_i32_1 = arith.constant 0 : i32
    return %c0_i32, %c0_i32_0 : i32, i32
  }
  func.func @transform_1(%arg0: i32) -> (i32, i32) {
    %c0_i32 = arith.constant 0 : i32
    %c0_i32_0 = arith.constant 0 : i32
    %c0_i32_1 = arith.constant 0 : i32
    return %c0_i32, %c0_i32_0 : i32, i32
  }
  func.func @transform_2(%arg0: i32) -> (i32, i32) {
    %c0_i32 = arith.constant 0 : i32
    %c0_i32_0 = arith.constant 0 : i32
    %c0_i32_1 = arith.constant 0 : i32
    return %c0_i32, %c0_i32_0 : i32, i32
  }
  func.func @transform_3(%arg0: i32) -> (i32, i32) {
    %c0_i32 = arith.constant 0 : i32
    %c0_i32_0 = arith.constant 0 : i32
    %c0_i32_1 = arith.constant 0 : i32
    return %c0_i32, %c0_i32_0 : i32, i32
  }
  func.func @transform_4(%arg0: i32) -> (i32, i32) {
    %c0_i32 = arith.constant 0 : i32
    %c0_i32_0 = arith.constant 0 : i32
    %c0_i32_1 = arith.constant 0 : i32
    return %c0_i32, %c0_i32_0 : i32, i32
  }
  func.func @transform_5(%arg0: i32) -> (i32, i32) {
    %c0_i32 = arith.constant 0 : i32
    %c0_i32_0 = arith.constant 0 : i32
    %c0_i32_1 = arith.constant 0 : i32
    return %c0_i32, %c0_i32_0 : i32, i32
  }
  func.func @transform_6(%arg0: i32) -> (i32, i32) {
    %c0_i32 = arith.constant 0 : i32
    %c0_i32_0 = arith.constant 0 : i32
    %c0_i32_1 = arith.constant 0 : i32
    return %c0_i32, %c0_i32_0 : i32, i32
  }
  func.func @transform_7(%arg0: i32) -> (i32, i32) {
    %c0_i32 = arith.constant 0 : i32
    %c0_i32_0 = arith.constant 0 : i32
    %c0_i32_1 = arith.constant 0 : i32
    return %c0_i32, %c0_i32_0 : i32, i32
  }
  func.func @transform_8(%arg0: i32) -> (i32, i32) {
    %c0_i32 = arith.constant 0 : i32
    %c0_i32_0 = arith.constant 0 : i32
    %c0_i32_1 = arith.constant 0 : i32
    return %c0_i32, %c0_i32_0 : i32, i32
  }
  func.func @transform_9(%arg0: i32) -> (i32, i32) {
    %c0_i32 = arith.constant 0 : i32
    %c0_i32_0 = arith.constant 0 : i32
    %c0_i32_1 = arith.constant 0 : i32
    return %c0_i32, %c0_i32_0 : i32, i32
  }
  func.func @transform_10(%arg0: i32) -> (i32, i32) {
    %c0_i32 = arith.constant 0 : i32
    %c0_i32_0 = arith.constant 0 : i32
    %c0_i32_1 = arith.constant 0 : i32
    return %c0_i32, %c0_i32_0 : i32, i32
  }
  func.func @transform_11(%arg0: i32) -> (i32, i32) {
    %c0_i32 = arith.constant 0 : i32
    %c0_i32_0 = arith.constant 0 : i32
    %c0_i32_1 = arith.constant 0 : i32
    return %c0_i32, %c0_i32_0 : i32, i32
  }
  func.func @transform_12(%arg0: i32) -> (i32, i32) {
    %c0_i32 = arith.constant 0 : i32
    %c0_i32_0 = arith.constant 0 : i32
    %c0_i32_1 = arith.constant 0 : i32
    return %c0_i32, %c0_i32_0 : i32, i32
  }
  func.func @transform_13(%arg0: i32) -> (i32, i32) {
    %c0_i32 = arith.constant 0 : i32
    %c0_i32_0 = arith.constant 0 : i32
    %c0_i32_1 = arith.constant 0 : i32
    return %c0_i32, %c0_i32_0 : i32, i32
  }
  func.func @transform_14(%arg0: i32) -> (i32, i32) {
    %c0_i32 = arith.constant 0 : i32
    %c0_i32_0 = arith.constant 0 : i32
    %c0_i32_1 = arith.constant 0 : i32
    return %c0_i32, %c0_i32_0 : i32, i32
  }
  func.func @transform_15(%arg0: i32) -> (i32, i32) {
    %c0_i32 = arith.constant 0 : i32
    %c0_i32_0 = arith.constant 0 : i32
    %c0_i32_1 = arith.constant 0 : i32
    return %c0_i32, %c0_i32_0 : i32, i32
  }
  func.func @transform_16(%arg0: i32) -> (i32, i32) {
    %c0_i32 = arith.constant 0 : i32
    %c0_i32_0 = arith.constant 0 : i32
    %c0_i32_1 = arith.constant 0 : i32
    return %c0_i32, %c0_i32_0 : i32, i32
  }
  func.func @transform_17(%arg0: i32) -> (i32, i32) {
    %c0_i32 = arith.constant 0 : i32
    %c0_i32_0 = arith.constant 0 : i32
    %c0_i32_1 = arith.constant 0 : i32
    return %c0_i32, %c0_i32_0 : i32, i32
  }
}

</mosaic_0001>

<bundles_post_ra>
// kernel: gru_encoder_forward.1
= control target key start
LH: loop header
LB: loop body
LE: loop exit
PB: predicated region body
PF: predicated region fallthrough
CT: control target
= control target key end

     0   :  { %v3109_v3 = vmov 0.0   ;;  %vm90_vm0 = vcmask 261120   ;;  %s3110_s19 = smov 64   ;;  %vm416_vm1 = vcmask 523264   ;;  %s4083_s3 = inlined_call_operand.vmem [shape: f32[32,192], index: 3, kind: input, shape index: {}]   ;;  %s4084_s2 = inlined_call_operand.vmem [shape: f32[32,192], index: 2, kind: input, shape index: {}]   ;;  %s4085_s1 = inlined_call_operand.vmem [shape: f32[64,32], index: 1, kind: input, shape index: {}]   ;;  %s4086_s4 = inlined_call_operand.vmem [shape: f32[64,192], index: 4, kind: input, shape index: {}]   ;;  %s4087_s0 = inlined_call_operand.vmem [shape: f32[64,32], index: 0, kind: input, shape index: {}]   ;;  %s4088_s5 = inlined_call_operand.vmem [shape: f32[1,192], index: 5, kind: input, shape index: {}]   ;;  %s4089_s6 = inlined_call_operand.vmem [shape: f32[1,64], index: 6, kind: input, shape index: {}]   ;;  %s4090_s8 = inlined_call_operand.vmem [shape: f32[64,192], index: 8, kind: input, shape index: {}]   ;;  %s4091_s7 = inlined_call_operand.vmem [shape: f32[64,192], index: 7, kind: input, shape index: {}]   ;;  %s4092_s9 = inlined_call_operand.vmem [shape: f32[64,192], index: 9, kind: input, shape index: {}]   ;;  %s4093_s10 = inlined_call_operand.vmem [shape: f32[1,192], index: 10, kind: input, shape index: {}]   ;;  %s4094_s11 = inlined_call_operand.vmem [shape: f32[1,64], index: 11, kind: input, shape index: {}]   ;;  %s4095_s16 = inlined_call_operand.vmem [shape: f32[64,64], index: 16, kind: output, shape index: {0}]   ;;  %s4096_s12 = inlined_call_operand.vmem [shape: f32[64,32], index: 12, kind: input, shape index: {}]   ;;  %s4097_s13 = inlined_call_operand.vmem [shape: f32[1,32], index: 13, kind: input, shape index: {}]   ;;  %s4098_s14 = inlined_call_operand.vmem [shape: f32[1,32], index: 14, kind: input, shape index: {}]   ;;  %s4099_s15 = inlined_call_operand.vmem [shape: f32[1,32], index: 15, kind: input, shape index: {}]   ;;  %s4100_s17 = inlined_call_operand.vmem [shape: f32[16,32], index: 17, kind: output, shape index: {1}]  }
   0x1   :  { %4103 = sst [smem:[#allocation2_spill]] %s4083_s3  ;;  %179 = vmatprep.mubr.f32.mxu0 %v3109_v3  ;;  %484 = vmatprep.mubr.f32.mxu1 %v3109_v3  ;;  %v66_v18 = vld [vmem:[%s4085_s1] sm:$0xff]  ;;  %v394_v22 = vld [vmem:[%s4086_s4 + $0x8] sm:$0xff]  ;;  %v396_v23 = vld [vmem:[%s4086_s4 + $0x18] sm:$0xff] }
   0x2   :  { %4104 = sst [smem:[#allocation3_spill]] %s4084_s2  ;;  %s4105_s26 = sld [smem:[#allocation2_spill]]  ;;  %v393_v24 = vld [vmem:[%s4086_s4] sm:$0xff]  ;;  %v3264_v27 = vpack.c.bf16 %v396_v23, %v394_v22  ;;  %v395_v28 = vld [vmem:[%s4086_s4 + $0x10] sm:$0xff]  ;;  %v398_v29 = vld [vmem:[%s4086_s4 + $0x28] sm:$0xff] }
   0x3   :  { %s4106_s29 = sld [smem:[#allocation3_spill]]  ;;  %v3272_v31 = vpack.c.bf16 %v395_v28, %v393_v24  ;;  %v400_v32 = vld [vmem:[%s4086_s4 + $0x38] sm:$0xff]  ;;  %v397_v33 = vld [vmem:[%s4086_s4 + $0x20] sm:$0xff]  ;;  %v399_v34 = vld [vmem:[%s4086_s4 + $0x30] sm:$0xff] }
   0x4   :  { %2669 = vmatprep.subr.bf16.mxu1 %v3264_v27  ;;  %v3284_v35 = vpack.c.bf16 %v400_v32, %v398_v29  ;;  %v402_v36 = vld [vmem:[%s4086_s4 + $0x48] sm:$0xff]  ;;  %v404_v37 = vld [vmem:[%s4086_s4 + $0x58] sm:$0xff]  ;;  %v3294_v38 = vpack.c.bf16 %v399_v34, %v397_v33  ;;  %v401_v41 = vld [vmem:[%s4086_s4 + $0x40] sm:$0xff] }
   0x5   :  { %2671 = vmatpush1.bf16.msra.mxu1 %v3272_v31  ;;  %v67_v39 = vld [vmem:[%s4085_s1 + $0x8] sm:$0xff]  ;;  %v403_v42 = vld [vmem:[%s4086_s4 + $0x50] sm:$0xff]  ;;  %v3307_v43 = vpack.c.bf16 %v404_v37, %v402_v36  ;;  %v408_v45 = vld [vmem:[%s4086_s4 + $0x78] sm:$0xff] }
   0x6   :  { %2673 = vmatprep.subr.bf16.mxu1 %v3284_v35  ;;  %v406_v44 = vld [vmem:[%s4086_s4 + $0x68] sm:$0xff]  ;;  %v3317_v46 = vpack.c.bf16 %v403_v42, %v401_v41  ;;  %v68_v47 = vld [vmem:[%s4085_s1 + $0x10] sm:$0xff]  ;;  %v405_v49 = vld [vmem:[%s4086_s4 + $0x60] sm:$0xff] }
   0x7   :  { %v3323_v48 = vpack.c.bf16 %v408_v45, %v406_v44  ;;  %v407_v50 = vld [vmem:[%s4086_s4 + $0x70] sm:$0xff]  ;;  %v69_v52 = vld [vmem:[%s4085_s1 + $0x18] sm:$0xff]  ;;  %v70_v53 = vld [vmem:[%s4085_s1 + $0x20] sm:$0xff]  ;;  %s3111_s4 = smov 96  }
   0x8   :  { %v83_v0 = vld [vmem:[%s4105_s26 + $0x8] sm:$0xff]  ;;  %v85_v1 = vld [vmem:[%s4105_s26 + $0x18] sm:$0xff]  ;;  %v82_v2 = vld [vmem:[%s4105_s26] sm:$0xff]  ;;  %v3335_v51 = vpack.c.bf16 %v407_v50, %v405_v49 }
   0x9   :  { %v2652_v4 = vpack.c.bf16 %v85_v1, %v83_v0  ;;  %v84_v5 = vld [vmem:[%s4105_s26 + $0x10] sm:$0xff]  ;;  %v87_v6 = vld [vmem:[%s4105_s26 + $0x28] sm:$0xff]  ;;  %v89_v7 = vld [vmem:[%s4105_s26 + $0x38] sm:$0xff]  ;;  %2675 = vmatpush1.bf16.msra.mxu1 %v3294_v38 }
   0xa   :  { %v2654_v8 = vpack.c.bf16 %v84_v5, %v82_v2  ;;  %v2656_v9 = vpack.c.bf16 %v89_v7, %v87_v6  ;;  %v86_v10 = vld [vmem:[%s4105_s26 + $0x20] sm:$0xff]  ;;  %v88_v11 = vld [vmem:[%s4105_s26 + $0x30] sm:$0xff]  ;;  %v75_v12 = vld [vmem:[%s4106_s29 + $0x8] sm:$0xff]  ;;  %2677 = vmatprep.subr.bf16.mxu1 %v3307_v43 }
   0xb   :  { %2653 = vmatprep.subr.bf16.mxu0 %v2652_v4  ;;  %v77_v13 = vld [vmem:[%s4106_s29 + $0x18] sm:$0xff]  ;;  %v2658_v14 = vpack.c.bf16 %v88_v11, %v86_v10  ;;  %v74_v16 = vld [vmem:[%s4106_s29] sm:$0xff]  ;;  %v76_v17 = vld [vmem:[%s4106_s29 + $0x10] sm:$0xff]  ;;  %v55_v4 = vlaneseq }
   0xc   :  { %2655 = vmatpush1.bf16.msra.mxu0 %v2654_v8  ;;  %v2660_v15 = vpack.c.bf16 %v77_v13, %v75_v12  ;;  %v79_v19 = vld [vmem:[%s4106_s29 + $0x28] sm:$0xff]  ;;  %v81_v20 = vld [vmem:[%s4106_s29 + $0x38] sm:$0xff]  ;;  %v78_v21 = vld [vmem:[%s4106_s29 + $0x20] sm:$0xff]  ;;  %v2662_v25 = vpack.c.bf16 %v76_v17, %v74_v16 }
   0xd   :  { %2657 = vmatprep.subr.bf16.mxu0 %v2656_v9  ;;  %v80_v26 = vld [vmem:[%s4106_s29 + $0x30] sm:$0xff]  ;;  %v2664_v30 = vpack.c.bf16 %v81_v20, %v79_v19  ;;  %2679 = vmatpush1.bf16.msra.mxu1 %v3317_v46  ;;  %v71_v54 = vld [vmem:[%s4085_s1 + $0x28] sm:$0xff]  ;;  %v73_v56 = vld [vmem:[%s4085_s1 + $0x38] sm:$0xff]  ;;  %v3425_v5 = vshrl.u32 %v55_v4, 7 }
   0xe   :  { %v2666_v40 = vpack.c.bf16 %v80_v26, %v78_v21  ;;  %2681 = vmatprep.subr.bf16.mxu1 %v3323_v48  ;;  %v72_v55 = vld [vmem:[%s4085_s1 + $0x30] sm:$0xff]  ;;  %v58_v57 = vld [vmem:[%s4087_s0] sm:$0xff]  ;;  %v59_v58 = vld [vmem:[%s4087_s0 + $0x8] sm:$0xff] }
   0xf   :  { %v60_v59 = vld [vmem:[%s4087_s0 + $0x10] sm:$0xff]  ;;  %v61_v60 = vld [vmem:[%s4087_s0 + $0x18] sm:$0xff]  ;;  %v62_v61 = vld [vmem:[%s4087_s0 + $0x20] sm:$0xff]  ;;  %v369_v6 = vsub.s32 0, %v3425_v5  ;;  %v373_v10 = vsub.s32 1, %v3425_v5 }
  0x10   :  { %2659 = vmatpush1.bf16.msra.mxu0 %v2658_v14  ;;  %v63_v62 = vld [vmem:[%s4087_s0 + $0x28] sm:$0xff]  ;;  %v64_v63 = vld [vmem:[%s4087_s0 + $0x30] sm:$0xff]  ;;  %v65_v0 = vld [vmem:[%s4087_s0 + $0x38] sm:$0xff] }
  0x11   :  { %2661 = vmatprep.subr.bf16.mxu0 %v2660_v15  ;;  %2683 = vmatpush1.bf16.msra.mxu1 %v3335_v51  ;;  %v365_v7 = vld [vmem:[%s4088_s5] sm:$0x3] }
  0x12   :  { %2685 = vmatprep.subr.bf16.mxu1 %v3264_v27  ;;  %v370_v8 = vrot.slane %v365_v7, %v369_v6  ;;  %v374_v14 = vrot.slane %v365_v7, %v373_v10 }
  0x13   :  { %2547 = vmatmul.mubr.msk.f32.vlgmr.msra.gmra.mrb[0].mxu0 %vm90_vm0, %v66_v18 }
  0x14   :  { %2663 = vmatpush1.bf16.msra.mxu0 %v2662_v25  ;;  %185 = vmatprep.mubr.f32.mxu0 %v3109_v3 }
  0x15   :  { %2665 = vmatprep.subr.bf16.mxu0 %v2664_v30  ;;  %485 = vmatmul.mubr.f32.vlgmr.msra.gmra.mrb[0].mxu1 %v3109_v3 }
  0x16   :  { %2687 = vmatpush1.bf16.msra.mxu1 %v3272_v31  ;;  %579 = vmatprep.mubr.f32.mxu1 %v3109_v3 }
  0x17   :  { %2548 = vmatmul.mubr.msk.f32.gmra.mrb[2].mxu0 %vm90_vm0, %v67_v39  ;;  %2689 = vmatprep.subr.bf16.mxu1 %v3284_v35 }
  0x18   :  { %191 = vmatprep.mubr.f32.mxu0 %v3109_v3  ;;  %2667 = vmatpush1.bf16.msra.mxu0 %v2666_v40 }
  0x19   :  { %2733 = vmatprep.subr.bf16.mxu0 %v3264_v27 }
  0x1a   :  { %2691 = vmatpush1.bf16.msra.mxu1 %v3294_v38 }
  0x1b   :  { %2549 = vmatmul.mubr.msk.f32.gmra.mrb[4].mxu0 %vm90_vm0, %v68_v47  ;;  %2693 = vmatprep.subr.bf16.mxu1 %v3307_v43  ;;  %v3459_v47 = vld [vmem:[%s4089_s6] ss:$0 sm:$0xff] }
  0x1c   :  { %197 = vmatprep.mubr.f32.mxu0 %v3109_v3 }
  0x1e   :  { %2695 = vmatpush1.bf16.msra.mxu1 %v3317_v46 }
  0x1f   :  { %2550 = vmatmul.mubr.msk.f32.gmra.mrb[6].mxu0 %vm90_vm0, %v69_v52  ;;  %2697 = vmatprep.subr.bf16.mxu1 %v3323_v48 }
  0x20   :  { %203 = vmatprep.mubr.f32.mxu0 %v3109_v3 }
  0x22   :  { %2699 = vmatpush1.bf16.msra.mxu1 %v3335_v51 }
  0x23   :  { %2551 = vmatmul.mubr.msk.f32.gmra.mrb[8].mxu0 %vm90_vm0, %v70_v53  ;;  %2701 = vmatprep.subr.bf16.mxu1 %v3264_v27 }
  0x24   :  { %209 = vmatprep.mubr.f32.mxu0 %v3109_v3 }
  0x27   :  { %2552 = vmatmul.mubr.msk.f32.gmra.mrb[10].mxu0 %vm90_vm0, %v71_v54 }
  0x28   :  { %215 = vmatprep.mubr.f32.mxu0 %v3109_v3 }
  0x2b   :  { %2553 = vmatmul.mubr.msk.f32.gmra.mrb[12].mxu0 %vm90_vm0, %v72_v55 }
  0x2c   :  { %221 = vmatprep.mubr.f32.mxu0 %v3109_v3 }
  0x2f   :  { %2554 = vmatmul.mubr.msk.f32.gmra.mrb[14].mxu0 %vm90_vm0, %v73_v56 }
  0x30   :  { %316 = vmatprep.mubr.f32.mxu0 %v3109_v3 }
  0x33   :  { %2555 = vmatmul.mubr.msk.f32.vlgmr.msra.gmra.mrb[0].mxu0 %vm90_vm0, %v58_v57 }
  0x34   :  { %322 = vmatprep.mubr.f32.mxu0 %v3109_v3  ;;  %2735 = vmatpush1.bf16.msra.mxu0 %v3272_v31 }
  0x35   :  { %2737 = vmatprep.subr.bf16.mxu0 %v3284_v35 }
  0x37   :  { %2556 = vmatmul.mubr.msk.f32.gmra.mrb[2].mxu0 %vm90_vm0, %v59_v58 }
  0x38   :  { %328 = vmatprep.mubr.f32.mxu0 %v3109_v3  ;;  %2739 = vmatpush1.bf16.msra.mxu0 %v3294_v38 }
  0x39   :  { %2741 = vmatprep.subr.bf16.mxu0 %v3307_v43 }
  0x3b   :  { %2557 = vmatmul.mubr.msk.f32.gmra.mrb[4].mxu0 %vm90_vm0, %v60_v59 }
  0x3c   :  { %334 = vmatprep.mubr.f32.mxu0 %v3109_v3  ;;  %2743 = vmatpush1.bf16.msra.mxu0 %v3317_v46 }
  0x3d   :  { %2745 = vmatprep.subr.bf16.mxu0 %v3323_v48 }
  0x3f   :  { %2558 = vmatmul.mubr.msk.f32.gmra.mrb[6].mxu0 %vm90_vm0, %v61_v60 }
  0x40   :  { %340 = vmatprep.mubr.f32.mxu0 %v3109_v3  ;;  %2747 = vmatpush1.bf16.msra.mxu0 %v3335_v51 }
  0x41   :  { %2765 = vmatprep.subr.bf16.mxu0 %v3264_v27 }
  0x43   :  { %2559 = vmatmul.mubr.msk.f32.gmra.mrb[8].mxu0 %vm90_vm0, %v62_v61 }
  0x44   :  { %346 = vmatprep.mubr.f32.mxu0 %v3109_v3 }
  0x47   :  { %2560 = vmatmul.mubr.msk.f32.gmra.mrb[10].mxu0 %vm90_vm0, %v63_v62 }
  0x48   :  { %352 = vmatprep.mubr.f32.mxu0 %v3109_v3 }
  0x4b   :  { %2561 = vmatmul.mubr.msk.f32.gmra.mrb[12].mxu0 %vm90_vm0, %v64_v63 }
  0x4c   :  { %358 = vmatprep.mubr.f32.mxu0 %v3109_v3 }
  0x4f   :  { %2562 = vmatmul.mubr.msk.f32.gmra.mrb[14].mxu0 %vm90_vm0, %v65_v0 }
  0x50   :  { %864 = vmatprep.mubr.f32.mxu0 %v3109_v3 }
  0xe8   :  { %v486_v1 = vpop.f32.mrb[0].mxu1 }
  0xe9   :  { %v488_v2 = vpop.f32.mrb[1].mxu1 }
  0xea   :  { %v498_v52 = vadd.f32 %v3459_v47, %v488_v2 }
 0x106   :  { %v318_v9 = vpop.f32.mrb[0].mxu0 }
 0x107   :  { %v377_v11 = vadd.f32 %v370_v8, %v318_v9  ;;  %v320_v12 = vpop.f32.mrb[1].mxu0 }
 0x108   :  { %v378_v57 = vadd.f32 %v374_v14, %v320_v12 }
 0x109   :  { %v491_v13 = vadd.f32 %v486_v1, %v377_v11 }
 0x10a   :  { %v324_v15 = vpop.f32.mrb[2].mxu0 }
 0x10b   :  { %v2564_v16 = vmul.f32 -1.442695, %v491_v13  ;;  %v379_v17 = vadd.f32 %v370_v8, %v324_v15  ;;  %v326_v18 = vpop.f32.mrb[3].mxu0 }
 0x10c   :  { %v3436_v19 = vadd.f32 %v374_v14, %v326_v18 }
 0x10d   :  { %3009 = vpow2.f32 %v2564_v16 }
 0x10e   :  { %v330_v20 = vpop.f32.mrb[4].mxu0 }
 0x10f   :  { %v3438_v21 = vadd.f32 %v370_v8, %v330_v20  ;;  %v332_v22 = vpop.f32.mrb[5].mxu0 }
 0x110   :  { %v3440_v23 = vadd.f32 %v374_v14, %v332_v22 }
 0x112   :  { %v336_v24 = vpop.f32.mrb[6].mxu0 }
 0x113   :  { %v3442_v25 = vadd.f32 %v370_v8, %v336_v24  ;;  %v338_v26 = vpop.f32.mrb[7].mxu0 }
 0x114   :  { %v3444_v28 = vadd.f32 %v374_v14, %v338_v26 }
 0x116   :  { %v342_v29 = vpop.f32.mrb[8].mxu0 }
 0x117   :  { %v3010_v30 = vpop.eup %3009  ;;  %v3446_v32 = vadd.f32 %v370_v8, %v342_v29  ;;  %v344_v33 = vpop.f32.mrb[9].mxu0 }
 0x118   :  { %v495_v34 = vadd.f32 1.0, %v3010_v30  ;;  %v3448_v36 = vadd.f32 %v374_v14, %v344_v33 }
 0x11a   :  { %3011 = vrcp.f32 %v495_v34  ;;  %v348_v37 = vpop.f32.mrb[10].mxu0 }
 0x11b   :  { %v3450_v39 = vadd.f32 %v370_v8, %v348_v37  ;;  %v350_v40 = vpop.f32.mrb[11].mxu0 }
 0x11c   :  { %v3452_v41 = vadd.f32 %v374_v14, %v350_v40 }
 0x11e   :  { %v354_v42 = vpop.f32.mrb[12].mxu0 }
 0x11f   :  { %v3454_v44 = vadd.f32 %v370_v8, %v354_v42  ;;  %v356_v45 = vpop.f32.mrb[13].mxu0 }
 0x120   :  { %v3461_v49 = vadd.f32 %v374_v14, %v356_v45 }
 0x122   :  { %v360_v50 = vpop.f32.mrb[14].mxu0 }
 0x123   :  { %v3464_v53 = vadd.f32 %v370_v8, %v360_v50  ;;  %v362_v54 = vpop.f32.mrb[15].mxu0 }
 0x124   :  { %v3012_v55 = vpop.eup %3011  ;;  %v3466_v56 = vadd.f32 %v374_v14, %v362_v54 }
 0x125   :  { %v499_v58 = vmul.f32 %v3012_v55, %v498_v52  ;;  %v502_v61 = vsub.f32 1.0, %v3012_v55  ;;  %v508_v63 = vmul.f32 0.0, %v3012_v55 }
 0x127   :  { %v500_v59 = vadd.f32 %v499_v58, %v378_v57 }
 0x129   :  { %3013 = vtanh.f32 %v500_v59 }
 0x133   :  { %v3014_v60 = vpop.eup %3013 }
 0x134   :  { %504 = vrot.lane.b32.xlu0 %v3014_v60, %s3110_s19 }
 0x1a6   :  { %v505_v62 = vpop.permute.xlu0 %504 }
 0x1a7   :  { %v507_v0 = vmul.f32 %v505_v62, %v502_v61 }
 0x1a9   :  { %v509_v1 = vadd.f32 %v508_v63, %v507_v0 }
 0x1ab   :  { %511 = vrot.lane.b32.xlu0 %v509_v1, %s3110_s19 }
 0x21d   :  { %v3470_v2 = vpop.permute.xlu0 %511 }
 0x21e   :  { %2565 = vmatmul.mubr.msk.f32.vlgmr.msra.gmra.mrb[2].mxu1 %vm416_vm1, %v3470_v2 }
 0x21f   :  { %2703 = vmatpush1.bf16.msra.mxu1 %v3272_v31  ;;  %674 = vmatprep.mubr.f32.mxu1 %v3109_v3 }
 0x220   :  { %2705 = vmatprep.subr.bf16.mxu1 %v3284_v35 }
 0x223   :  { %2707 = vmatpush1.bf16.msra.mxu1 %v3294_v38 }
 0x224   :  { %2709 = vmatprep.subr.bf16.mxu1 %v3307_v43 }
 0x227   :  { %2711 = vmatpush1.bf16.msra.mxu1 %v3317_v46 }
 0x228   :  { %2713 = vmatprep.subr.bf16.mxu1 %v3323_v48 }
 0x22b   :  { %2715 = vmatpush1.bf16.msra.mxu1 %v3335_v51 }
 0x22c   :  { %2717 = vmatprep.subr.bf16.mxu1 %v3264_v27 }
 0x2f1   :  { %v581_v7 = vpop.f32.mrb[2].mxu1 }
 0x2f2   :  { %v586_v8 = vadd.f32 %v581_v7, %v379_v17  ;;  %v583_v9 = vpop.f32.mrb[3].mxu1 }
 0x2f3   :  { %v593_v14 = vadd.f32 %v3459_v47, %v583_v9 }
 0x2f4   :  { %v2566_v11 = vmul.f32 -1.442695, %v586_v8 }
 0x2f6   :  { %3015 = vpow2.f32 %v2566_v11 }
 0x300   :  { %v3016_v12 = vpop.eup %3015 }
 0x301   :  { %v590_v13 = vadd.f32 1.0, %v3016_v12 }
 0x303   :  { %3017 = vrcp.f32 %v590_v13 }
 0x30d   :  { %v3018_v15 = vpop.eup %3017 }
 0x30e   :  { %v594_v16 = vmul.f32 %v3018_v15, %v593_v14  ;;  %v597_v22 = vsub.f32 1.0, %v3018_v15  ;;  %v603_v26 = vmul.f32 %v3018_v15, %v509_v1 }
 0x310   :  { %v595_v18 = vadd.f32 %v594_v16, %v3436_v19 }
 0x312   :  { %3019 = vtanh.f32 %v595_v18 }
 0x31c   :  { %v3020_v20 = vpop.eup %3019 }
 0x31d   :  { %599 = vrot.lane.b32.xlu1 %v3020_v20, %s3110_s19 }
 0x38f   :  { %v600_v24 = vpop.permute.xlu1 %599 }
 0x390   :  { %v602_v17 = vmul.f32 %v600_v24, %v597_v22 }
 0x392   :  { %v604_v29 = vadd.f32 %v603_v26, %v602_v17 }
 0x394   :  { %606 = vrot.lane.b32.xlu1 %v604_v29, %s3110_s19 }
 0x406   :  { %v3487_v30 = vpop.permute.xlu1 %606 }
 0x407   :  { %2567 = vmatmul.mubr.msk.f32.vlgmr.msra.gmra.mrb[4].mxu1 %vm416_vm1, %v3487_v30 }
 0x408   :  { %2719 = vmatpush1.bf16.msra.mxu1 %v3272_v31  ;;  %769 = vmatprep.mubr.f32.mxu1 %v3109_v3 }
 0x409   :  { %2721 = vmatprep.subr.bf16.mxu1 %v3284_v35 }
 0x40c   :  { %2723 = vmatpush1.bf16.msra.mxu1 %v3294_v38 }
 0x40d   :  { %2725 = vmatprep.subr.bf16.mxu1 %v3307_v43 }
 0x410   :  { %2727 = vmatpush1.bf16.msra.mxu1 %v3317_v46 }
 0x411   :  { %2729 = vmatprep.subr.bf16.mxu1 %v3323_v48 }
 0x414   :  { %2731 = vmatpush1.bf16.msra.mxu1 %v3335_v51 }
 0x415   :  { %2749 = vmatprep.subr.bf16.mxu1 %v3264_v27 }
 0x4da   :  { %v676_v19 = vpop.f32.mrb[4].mxu1 }
 0x4db   :  { %v681_v33 = vadd.f32 %v676_v19, %v3438_v21  ;;  %v678_v34 = vpop.f32.mrb[5].mxu1 }
 0x4dc   :  { %v688_v45 = vadd.f32 %v3459_v47, %v678_v34 }
 0x4dd   :  { %v2568_v37 = vmul.f32 -1.442695, %v681_v33 }
 0x4df   :  { %3021 = vpow2.f32 %v2568_v37 }
 0x4e9   :  { %v3022_v40 = vpop.eup %3021 }
 0x4ea   :  { %v685_v42 = vadd.f32 1.0, %v3022_v40 }
 0x4ec   :  { %3023 = vrcp.f32 %v685_v42 }
 0x4f6   :  { %v3024_v50 = vpop.eup %3023 }
 0x4f7   :  { %v689_v52 = vmul.f32 %v3024_v50, %v688_v45  ;;  %v692_v57 = vsub.f32 1.0, %v3024_v50  ;;  %v698_v59 = vmul.f32 %v3024_v50, %v604_v29 }
 0x4f9   :  { %v690_v54 = vadd.f32 %v689_v52, %v3440_v23 }
 0x4fb   :  { %3025 = vtanh.f32 %v690_v54 }
 0x505   :  { %v3026_v55 = vpop.eup %3025 }
 0x506   :  { %694 = vrot.lane.b32.xlu0 %v3026_v55, %s3110_s19 }
 0x578   :  { %v695_v58 = vpop.permute.xlu0 %694 }
 0x579   :  { %v697_v21 = vmul.f32 %v695_v58, %v692_v57 }
 0x57b   :  { %v699_v60 = vadd.f32 %v698_v59, %v697_v21 }
 0x57d   :  { %701 = vrot.lane.b32.xlu1 %v699_v60, %s3110_s19 }
 0x5ef   :  { %v3505_v61 = vpop.permute.xlu1 %701 }
 0x5f0   :  { %2569 = vmatmul.mubr.msk.f32.vlgmr.msra.gmra.mrb[6].mxu1 %vm416_vm1, %v3505_v61 }
 0x5f1   :  { %2751 = vmatpush1.bf16.msra.mxu1 %v3272_v31  ;;  %959 = vmatprep.mubr.f32.mxu1 %v3109_v3 }
 0x5f2   :  { %2753 = vmatprep.subr.bf16.mxu1 %v3284_v35 }
 0x5f5   :  { %2755 = vmatpush1.bf16.msra.mxu1 %v3294_v38 }
 0x5f6   :  { %2757 = vmatprep.subr.bf16.mxu1 %v3307_v43 }
 0x5f9   :  { %2759 = vmatpush1.bf16.msra.mxu1 %v3317_v46 }
 0x5fa   :  { %2761 = vmatprep.subr.bf16.mxu1 %v3323_v48 }
 0x5fd   :  { %2763 = vmatpush1.bf16.msra.mxu1 %v3335_v51 }
 0x5fe   :  { %2781 = vmatprep.subr.bf16.mxu1 %v3264_v27 }
 0x6c3   :  { %v771_v23 = vpop.f32.mrb[6].mxu1 }
 0x6c4   :  { %v776_v62 = vadd.f32 %v771_v23, %v3442_v25  ;;  %v773_v63 = vpop.f32.mrb[7].mxu1 }
 0x6c5   :  { %v783_v8 = vadd.f32 %v3459_v47, %v773_v63 }
 0x6c6   :  { %v2570_v0 = vmul.f32 -1.442695, %v776_v62 }
 0x6c8   :  { %3027 = vpow2.f32 %v2570_v0 }
 0x6d2   :  { %v3028_v1 = vpop.eup %3027 }
 0x6d3   :  { %v780_v7 = vadd.f32 1.0, %v3028_v1 }
 0x6d5   :  { %3029 = vrcp.f32 %v780_v7 }
 0x6df   :  { %v3030_v9 = vpop.eup %3029 }
 0x6e0   :  { %v784_v11 = vmul.f32 %v3030_v9, %v783_v8  ;;  %v787_v27 = vsub.f32 1.0, %v3030_v9  ;;  %v793_v15 = vmul.f32 %v3030_v9, %v699_v60 }
 0x6e2   :  { %v785_v12 = vadd.f32 %v784_v11, %v3444_v28 }
 0x6e4   :  { %3031 = vtanh.f32 %v785_v12 }
 0x6ee   :  { %v3032_v13 = vpop.eup %3031 }
 0x6ef   :  { %789 = vrot.lane.b32.xlu0 %v3032_v13, %s3110_s19 }
 0x761   :  { %v790_v14 = vpop.permute.xlu0 %789 }
 0x762   :  { %v792_v25 = vmul.f32 %v790_v14, %v787_v27 }
 0x764   :  { %v794_v16 = vadd.f32 %v793_v15, %v792_v25 }
 0x766   :  { %796 = vrot.lane.b32.xlu1 %v794_v16, %s3110_s19 }
 0x7d8   :  { %v3523_v18 = vpop.permute.xlu1 %796 }
 0x7d9   :  { %2571 = vmatmul.mubr.msk.f32.vlgmr.msra.gmra.mrb[16].mxu0 %vm416_vm1, %v3523_v18 }
 0x7da   :  { %2767 = vmatpush1.bf16.msra.mxu0 %v3272_v31  ;;  %1054 = vmatprep.mubr.f32.mxu0 %v3109_v3 }
 0x7db   :  { %2769 = vmatprep.subr.bf16.mxu0 %v3284_v35 }
 0x7de   :  { %2771 = vmatpush1.bf16.msra.mxu0 %v3294_v38 }
 0x7df   :  { %2773 = vmatprep.subr.bf16.mxu0 %v3307_v43 }
 0x7e2   :  { %2775 = vmatpush1.bf16.msra.mxu0 %v3317_v46 }
 0x7e3   :  { %2777 = vmatprep.subr.bf16.mxu0 %v3323_v48 }
 0x7e6   :  { %2779 = vmatpush1.bf16.msra.mxu0 %v3335_v51 }
 0x8ac   :  { %v866_v28 = vpop.f32.mrb[16].mxu0 }
 0x8ad   :  { %v871_v20 = vadd.f32 %v866_v28, %v3446_v32  ;;  %v868_v22 = vpop.f32.mrb[17].mxu0 }
 0x8ae   :  { %v878_v29 = vadd.f32 %v3459_v47, %v868_v22 }
 0x8af   :  { %v2572_v24 = vmul.f32 -1.442695, %v871_v20 }
 0x8b1   :  { %3033 = vpow2.f32 %v2572_v24 }
 0x8bb   :  { %v3034_v26 = vpop.eup %3033 }
 0x8bc   :  { %v875_v17 = vadd.f32 1.0, %v3034_v26 }
 0x8be   :  { %3035 = vrcp.f32 %v875_v17 }
 0x8c8   :  { %v3036_v19 = vpop.eup %3035 }
 0x8c9   :  { %v879_v33 = vmul.f32 %v3036_v19, %v878_v29  ;;  %v882_v40 = vsub.f32 1.0, %v3036_v19  ;;  %v888_v45 = vmul.f32 %v3036_v19, %v794_v16 }
 0x8cb   :  { %v880_v34 = vadd.f32 %v879_v33, %v3448_v36 }
 0x8cd   :  { %3037 = vtanh.f32 %v880_v34  ;;  %v1211_v34 = vld [vmem:[%s4090_s8 + $0x8] sm:$0xff] }
 0x8d7   :  { %v3038_v37 = vpop.eup %3037 }
 0x8d8   :  { %884 = vrot.lane.b32.xlu0 %v3038_v37, %s3110_s19  ;;  %v1210_v37 = vld [vmem:[%s4090_s8] sm:$0xff] }
 0x94a   :  { %v885_v42 = vpop.permute.xlu0 %884 }
 0x94b   :  { %v887_v32 = vmul.f32 %v885_v42, %v882_v40  ;;  %v1217_v42 = vld [vmem:[%s4090_s8 + $0x38] sm:$0xff] }
 0x94d   :  { %v889_v50 = vadd.f32 %v888_v45, %v887_v32 }
 0x94f   :  { %891 = vrot.lane.b32.xlu1 %v889_v50, %s3110_s19 }
 0x9c1   :  { %v3540_v52 = vpop.permute.xlu1 %891 }
 0x9c2   :  { %2573 = vmatmul.mubr.msk.f32.vlgmr.msra.gmra.mrb[8].mxu1 %vm416_vm1, %v3540_v52 }
 0x9c3   :  { %2783 = vmatpush1.bf16.msra.mxu1 %v3272_v31  ;;  %1149 = vmatprep.mubr.f32.mxu1 %v3109_v3 }
 0x9c4   :  { %2785 = vmatprep.subr.bf16.mxu1 %v3284_v35 }
 0x9c7   :  { %2787 = vmatpush1.bf16.msra.mxu1 %v3294_v38 }
 0x9c8   :  { %2789 = vmatprep.subr.bf16.mxu1 %v3307_v43 }
 0x9cb   :  { %2791 = vmatpush1.bf16.msra.mxu1 %v3317_v46 }
 0x9cc   :  { %2793 = vmatprep.subr.bf16.mxu1 %v3323_v48 }
 0x9cf   :  { %2795 = vmatpush1.bf16.msra.mxu1 %v3335_v51 }
 0xa95   :  { %v961_v36 = vpop.f32.mrb[8].mxu1 }
 0xa96   :  { %v966_v54 = vadd.f32 %v961_v36, %v3450_v39  ;;  %v963_v55 = vpop.f32.mrb[9].mxu1  ;;  %v1216_v36 = vld [vmem:[%s4090_s8 + $0x30] sm:$0xff] }
 0xa97   :  { %v973_v35 = vadd.f32 %v3459_v47, %v963_v55  ;;  %v1221_v55 = vld [vmem:[%s4090_s8 + $0x58] sm:$0xff] }
 0xa98   :  { %v2574_v57 = vmul.f32 -1.442695, %v966_v54  ;;  %v1219_v54 = vld [vmem:[%s4090_s8 + $0x48] sm:$0xff] }
 0xa9a   :  { %3039 = vpow2.f32 %v2574_v57 }
 0xaa4   :  { %v3040_v31 = vpop.eup %3039 }
 0xaa5   :  { %v970_v58 = vadd.f32 1.0, %v3040_v31  ;;  %v2804_v31 = vpack.c.bf16 %v1221_v55, %v1219_v54  ;;  %v1198_v55 = vld [vmem:[%s4091_s7 + $0x20] sm:$0xff] }
 0xaa7   :  { %3041 = vrcp.f32 %v970_v58  ;;  %v1218_v58 = vld [vmem:[%s4090_s8 + $0x40] sm:$0xff] }
 0xab1   :  { %v3042_v38 = vpop.eup %3041 }
 0xab2   :  { %v974_v59 = vmul.f32 %v3042_v38, %v973_v35  ;;  %v977_v48 = vsub.f32 1.0, %v3042_v38  ;;  %v983_v21 = vmul.f32 %v3042_v38, %v889_v50  ;;  %v1214_v50 = vld [vmem:[%s4090_s8 + $0x20] sm:$0xff]  ;;  %v1220_v35 = vld [vmem:[%s4090_s8 + $0x50] sm:$0xff]  ;;  %v1223_v38 = vld [vmem:[%s4090_s8 + $0x68] sm:$0xff] }
 0xab3   :  { %v2802_v57 = vpack.c.bf16 %v1216_v36, %v1214_v50  ;;  %v1201_v50 = vld [vmem:[%s4091_s7 + $0x38] sm:$0xff] }
 0xab4   :  { %v975_v43 = vadd.f32 %v974_v59, %v3452_v41  ;;  %v1225_v59 = vld [vmem:[%s4090_s8 + $0x78] sm:$0xff] }
 0xab6   :  { %3043 = vtanh.f32 %v975_v43 }
 0xac0   :  { %v3044_v46 = vpop.eup %3043 }
 0xac1   :  { %979 = vrot.lane.b32.xlu0 %v3044_v46, %s3110_s19  ;;  %v2806_v46 = vpack.c.bf16 %v1220_v35, %v1218_v58  ;;  %v1203_v58 = vld [vmem:[%s4091_s7 + $0x48] sm:$0xff]  ;;  %v1205_v35 = vld [vmem:[%s4091_s7 + $0x58] sm:$0xff] }
 0xb33   :  { %v980_v51 = vpop.permute.xlu0 %979 }
 0xb34   :  { %v982_v39 = vmul.f32 %v980_v51, %v977_v48  ;;  %v2808_v48 = vpack.c.bf16 %v1225_v59, %v1223_v38  ;;  %v1222_v51 = vld [vmem:[%s4090_s8 + $0x60] sm:$0xff]  ;;  %v2820_v59 = vpack.c.bf16 %v1205_v35, %v1203_v58 }
 0xb36   :  { %v984_v60 = vadd.f32 %v983_v21, %v982_v39  ;;  %v1224_v21 = vld [vmem:[%s4090_s8 + $0x70] sm:$0xff] }
 0xb37   :  { %v2810_v39 = vpack.c.bf16 %v1224_v21, %v1222_v51  ;;  %v1207_v51 = vld [vmem:[%s4091_s7 + $0x68] sm:$0xff]  ;;  %v1209_v21 = vld [vmem:[%s4091_s7 + $0x78] sm:$0xff] }
 0xb38   :  { %986 = vrot.lane.b32.xlu1 %v984_v60, %s3110_s19 }
 0xbaa   :  { %v3557_v23 = vpop.permute.xlu1 %986 }
 0xbab   :  { %2575 = vmatmul.mubr.msk.f32.vlgmr.msra.gmra.mrb[18].mxu0 %vm416_vm1, %v3557_v23 }
 0xbac   :  { %1314 = vmatprep.mubr.f32.mxu0 %v3109_v3 }
 0xc7e   :  { %v1056_v62 = vpop.f32.mrb[18].mxu0 }
 0xc7f   :  { %v1061_v41 = vadd.f32 %v1056_v62, %v3454_v44  ;;  %v1058_v63 = vpop.f32.mrb[19].mxu0  ;;  %v1197_v62 = vld [vmem:[%s4091_s7 + $0x18] sm:$0xff] }
 0xc80   :  { %v1068_v8 = vadd.f32 %v3459_v47, %v1058_v63 }
 0xc81   :  { %v2576_v0 = vmul.f32 -1.442695, %v1061_v41 }
 0xc83   :  { %3045 = vpow2.f32 %v2576_v0 }
 0xc8d   :  { %v3046_v1 = vpop.eup %3045 }
 0xc8e   :  { %v1065_v7 = vadd.f32 1.0, %v3046_v1 }
 0xc90   :  { %3047 = vrcp.f32 %v1065_v7 }
 0xc9a   :  { %v3048_v9 = vpop.eup %3047 }
 0xc9b   :  { %v1069_v11 = vmul.f32 %v3048_v9, %v1068_v8  ;;  %v1072_v27 = vsub.f32 1.0, %v3048_v9  ;;  %v1078_v15 = vmul.f32 %v3048_v9, %v984_v60  ;;  %v1195_v60 = vld [vmem:[%s4091_s7 + $0x8] sm:$0xff] }
 0xc9c   :  { %v2812_v41 = vpack.c.bf16 %v1197_v62, %v1195_v60  ;;  %v1505_v9 = vld [vmem:[%s4092_s9 + $0x8] sm:$0xff]  ;;  %v2824_v60 = vpack.c.bf16 %v1209_v21, %v1207_v51  ;;  %v1206_v62 = vld [vmem:[%s4091_s7 + $0x60] sm:$0xff] }
 0xc9d   :  { %v1070_v12 = vadd.f32 %v1069_v11, %v3461_v49  ;;  %v1507_v11 = vld [vmem:[%s4092_s9 + $0x18] sm:$0xff] }
 0xc9f   :  { %3049 = vtanh.f32 %v1070_v12  ;;  %v3640_v12 = vpack.c.bf16 %v1507_v11, %v1505_v9 }
 0xca1   :  { %2829 = vmatprep.subr.bf16.mxu1 %v3640_v12 }
 0xca9   :  { %v3050_v13 = vpop.eup %3049 }
 0xcaa   :  { %1074 = vrot.lane.b32.xlu0 %v3050_v13, %s3110_s19  ;;  %v1504_v13 = vld [vmem:[%s4092_s9] sm:$0xff] }
 0xd1c   :  { %v1075_v14 = vpop.permute.xlu0 %1074 }
 0xd1d   :  { %v1077_v44 = vmul.f32 %v1075_v14, %v1072_v27  ;;  %v1506_v27 = vld [vmem:[%s4092_s9 + $0x10] sm:$0xff] }
 0xd1e   :  { %v3648_v14 = vpack.c.bf16 %v1506_v27, %v1504_v13 }
 0xd1f   :  { %v1079_v25 = vadd.f32 %v1078_v15, %v1077_v44  ;;  %v1509_v15 = vld [vmem:[%s4092_s9 + $0x28] sm:$0xff]  ;;  %v1511_v44 = vld [vmem:[%s4092_s9 + $0x38] sm:$0xff] }
 0xd21   :  { %1081 = vrot.lane.b32.xlu1 %v1079_v25, %s3110_s19 }
 0xd93   :  { %v3567_v16 = vpop.permute.xlu1 %1081 }
 0xd94   :  { %2577 = vmatmul.mubr.msk.f32.vlgmr.msra.gmra.mrb[10].mxu1 %vm416_vm1, %v3567_v16 }
 0xd95   :  { %1591 = vmatprep.mubr.f32.mxu1 %v3109_v3  ;;  %2831 = vmatpush1.bf16.msra.mxu1 %v3648_v14 }
 0xe67   :  { %v1151_v28 = vpop.f32.mrb[10].mxu1 }
 0xe68   :  { %v1156_v49 = vadd.f32 %v1151_v28, %v3464_v53  ;;  %v1153_v20 = vpop.f32.mrb[11].mxu1  ;;  %v1213_v53 = vld [vmem:[%s4090_s8 + $0x18] sm:$0xff]  ;;  %v1508_v28 = vld [vmem:[%s4092_s9 + $0x20] sm:$0xff] }
 0xe69   :  { %v1163_v17 = vadd.f32 %v3459_v47, %v1153_v20  ;;  %v2796_v40 = vpack.c.bf16 %v1213_v53, %v1211_v34  ;;  %v1212_v47 = vld [vmem:[%s4090_s8 + $0x10] sm:$0xff]  ;;  %v1519_v34 = vld [vmem:[%s4092_s9 + $0x78] sm:$0xff] }
 0xe6a   :  { %v2578_v22 = vmul.f32 -1.442695, %v1156_v49  ;;  %v2798_v45 = vpack.c.bf16 %v1212_v47, %v1210_v37  ;;  %v1510_v49 = vld [vmem:[%s4092_s9 + $0x30] sm:$0xff]  ;;  %v1516_v37 = vld [vmem:[%s4092_s9 + $0x60] sm:$0xff] }
 0xe6b   :  { %2797 = vmatprep.subr.bf16.mxu0 %v2796_v40  ;;  %v3666_v20 = vpack.c.bf16 %v1510_v49, %v1508_v28  ;;  %v1518_v40 = vld [vmem:[%s4092_s9 + $0x70] sm:$0xff] }
 0xe6c   :  { %3051 = vpow2.f32 %v2578_v22  ;;  %2799 = vmatpush1.bf16.msra.mxu0 %v2798_v45  ;;  %v1513_v22 = vld [vmem:[%s4092_s9 + $0x48] sm:$0xff]  ;;  %v3702_v47 = vpack.c.bf16 %v1518_v40, %v1516_v37  ;;  %v1196_v45 = vld [vmem:[%s4091_s7 + $0x10] sm:$0xff] }
 0xe76   :  { %v3052_v24 = vpop.eup %3051 }
 0xe77   :  { %v1160_v26 = vadd.f32 1.0, %v3052_v24  ;;  %v1515_v24 = vld [vmem:[%s4092_s9 + $0x58] sm:$0xff] }
 0xe79   :  { %3053 = vrcp.f32 %v1160_v26  ;;  %v3676_v26 = vpack.c.bf16 %v1515_v24, %v1513_v22 }
 0xe83   :  { %v3054_v29 = vpop.eup %3053 }
 0xe84   :  { %v1164_v19 = vmul.f32 %v3054_v29, %v1163_v17  ;;  %v1167_v63 = vsub.f32 1.0, %v3054_v29  ;;  %v1173_v1 = vmul.f32 %v3054_v29, %v1079_v25  ;;  %v3658_v25 = vpack.c.bf16 %v1511_v44, %v1509_v15  ;;  %v1512_v17 = vld [vmem:[%s4092_s9 + $0x40] sm:$0xff]  ;;  %v1514_v29 = vld [vmem:[%s4092_s9 + $0x50] sm:$0xff] }
 0xe86   :  { %v1165_v33 = vadd.f32 %v1164_v19, %v3466_v56  ;;  %v1215_v56 = vld [vmem:[%s4090_s8 + $0x28] sm:$0xff]  ;;  %2833 = vmatprep.subr.bf16.mxu1 %v3658_v25  ;;  %v3684_v19 = vpack.c.bf16 %v1514_v29, %v1512_v17 }
 0xe87   :  { %v2800_v32 = vpack.c.bf16 %v1217_v42, %v1215_v56  ;;  %2835 = vmatpush1.bf16.msra.mxu1 %v3666_v20  ;;  %v3718_v56 = vand.u32 127, %v55_v4  ;;  %v1194_v42 = vld [vmem:[%s4091_s7] sm:$0xff] }
 0xe88   :  { %3055 = vtanh.f32 %v1165_v33  ;;  %2837 = vmatprep.subr.bf16.mxu1 %v3676_v26  ;;  %v1517_v33 = vld [vmem:[%s4092_s9 + $0x68] sm:$0xff]  ;;  %v2814_v36 = vpack.c.bf16 %v1196_v45, %v1194_v42 }
 0xe89   :  { %2801 = vmatprep.subr.bf16.mxu0 %v2800_v32  ;;  %v3694_v53 = vpack.c.bf16 %v1519_v34, %v1517_v33  ;;  %v1199_v32 = vld [vmem:[%s4091_s7 + $0x28] sm:$0xff]  ;;  %vm57_vm2 = vcmp.lt.s32.totalorder %v3718_v56, 32  ;;  %v2316_v56 = vld [vmem:[%s4096_s12 + $0x18] sm:$0xff] }
 0xe8a   :  { %2803 = vmatpush1.bf16.msra.mxu0 %v2802_v57  ;;  %v2816_v54 = vpack.c.bf16 %v1201_v50, %v1199_v32  ;;  %v1200_v57 = vld [vmem:[%s4091_s7 + $0x30] sm:$0xff]  ;;  %v1186_v9 = vsel %vm57_vm2, %v3505_v61, %v3557_v23  ;;  %v1183_v11 = vsel %vm57_vm2, %v3487_v30, %v3567_v16 }
 0xe8b   :  { %2805 = vmatprep.subr.bf16.mxu0 %v2804_v31  ;;  %2839 = vmatpush1.bf16.msra.mxu1 %v3684_v19  ;;  %v2818_v38 = vpack.c.bf16 %v1200_v57, %v1198_v55 }
 0xe8c   :  { %2841 = vmatprep.subr.bf16.mxu1 %v3694_v53 }
 0xe8e   :  { %2807 = vmatpush1.bf16.msra.mxu0 %v2806_v46  ;;  %v1204_v46 = vld [vmem:[%s4091_s7 + $0x50] sm:$0xff] }
 0xe8f   :  { %2809 = vmatprep.subr.bf16.mxu0 %v2808_v48  ;;  %2843 = vmatpush1.bf16.msra.mxu1 %v3702_v47  ;;  %v1192_v48 = vsel %vm57_vm2, %v3567_v16, %v3487_v30 }
 0xe90   :  { %2845 = vmatprep.subr.bf16.mxu1 %v3640_v12 }
 0xe92   :  { %v3056_v43 = vpop.eup %3055  ;;  %2811 = vmatpush1.bf16.msra.mxu0 %v2810_v39  ;;  %1592 = vmatmul.mubr.f32.vlgmr.msra.gmra.mrb[12].mxu1 %v3109_v3 }
 0xe93   :  { %1169 = vrot.lane.b32.xlu0 %v3056_v43, %s3110_s19  ;;  %2813 = vmatprep.subr.bf16.mxu0 %v2812_v41  ;;  %v1202_v43 = vld [vmem:[%s4091_s7 + $0x40] sm:$0xff]  ;;  %v1208_v41 = vld [vmem:[%s4091_s7 + $0x70] sm:$0xff] }
 0xe94   :  { %2847 = vmatpush1.bf16.msra.mxu1 %v3648_v14  ;;  %1686 = vmatprep.mubr.f32.mxu1 %v3109_v3  ;;  %v2822_v39 = vpack.c.bf16 %v1204_v46, %v1202_v43 }
 0xe95   :  { %2849 = vmatprep.subr.bf16.mxu1 %v3658_v25 }
 0xe98   :  { %2851 = vmatpush1.bf16.msra.mxu1 %v3666_v20 }
 0xe99   :  { %2853 = vmatprep.subr.bf16.mxu1 %v3676_v26 }
 0xe9c   :  { %2855 = vmatpush1.bf16.msra.mxu1 %v3684_v19 }
 0xe9d   :  { %2857 = vmatprep.subr.bf16.mxu1 %v3694_v53 }
 0xea0   :  { %2859 = vmatpush1.bf16.msra.mxu1 %v3702_v47 }
 0xea1   :  { %2861 = vmatprep.subr.bf16.mxu1 %v3640_v12 }
 0xf05   :  { %v1170_v0 = vpop.permute.xlu0 %1169 }
 0xf06   :  { %v1172_v7 = vmul.f32 %v1170_v0, %v1167_v63  ;;  %v1191_v63 = vsel %vm57_vm2, %v3557_v23, %v3505_v61  ;;  %v2826_v0 = vpack.c.bf16 %v1208_v41, %v1206_v62  ;;  %v1476_v61 = vld [vmem:[%s4093_s10] sm:$0x3] }
 0xf07   :  { %v1485_v15 = vrot.slane %v1476_v61, %v373_v10 }
 0xf08   :  { %v3630_v8 = vadd.f32 %v1173_v1, %v1172_v7  ;;  %v1190_v1 = vsel %vm57_vm2, %v3540_v52, %v3523_v18  ;;  %v1189_v7 = vsel %vm57_vm2, %v3523_v18, %v3540_v52  ;;  %v1481_v52 = vrot.slane %v1476_v61, %v369_v6 }
 0xf0a   :  { %1177 = vrot.lane.b32.xlu1 %v3630_v8, %s3110_s19 }
 0xf7c   :  { %v3733_v4 = vpop.permute.xlu1 %1177 }
 0xf7d   :  { %v3745_v31 = vsel %vm57_vm2, %v3733_v4, %v3470_v2  ;;  %v1180_v18 = vsel %vm57_vm2, %v3470_v2, %v3733_v4  ;;  %v1593_v2 = vpop.f32.mrb[12].mxu1 }
 0xf7e   :  { %2579 = vmatmul.mubr.msk.f32.vlgmr.msra.gmra.mrb[20].mxu0 %vm416_vm1, %v3745_v31  ;;  %v1595_v30 = vpop.f32.mrb[13].mxu1 }
 0xf7f   :  { %2815 = vmatpush1.bf16.msra.mxu0 %v2814_v36  ;;  %1320 = vmatprep.mubr.f32.mxu0 %v3109_v3 }
 0xf80   :  { %2817 = vmatprep.subr.bf16.mxu0 %v2816_v54 }
 0xf82   :  { %2580 = vmatmul.mubr.msk.f32.gmra.mrb[22].mxu0 %vm416_vm1, %v1192_v48 }
 0xf83   :  { %1326 = vmatprep.mubr.f32.mxu0 %v3109_v3  ;;  %2819 = vmatpush1.bf16.msra.mxu0 %v2818_v38 }
 0xf84   :  { %2821 = vmatprep.subr.bf16.mxu0 %v2820_v59  ;;  %v3872_v59 = vld [vmem:[%s4094_s11] ss:$0 sm:$0xff] }
 0xf86   :  { %2581 = vmatmul.mubr.msk.f32.gmra.mrb[24].mxu0 %vm416_vm1, %v1191_v63 }
 0xf87   :  { %1332 = vmatprep.mubr.f32.mxu0 %v3109_v3  ;;  %2823 = vmatpush1.bf16.msra.mxu0 %v2822_v39 }
 0xf88   :  { %2825 = vmatprep.subr.bf16.mxu0 %v2824_v60 }
 0xf8a   :  { %2582 = vmatmul.mubr.msk.f32.gmra.mrb[26].mxu0 %vm416_vm1, %v1190_v1 }
 0xf8b   :  { %1338 = vmatprep.mubr.f32.mxu0 %v3109_v3  ;;  %2827 = vmatpush1.bf16.msra.mxu0 %v2826_v0 }
 0xf8c   :  { %2893 = vmatprep.subr.bf16.mxu0 %v3640_v12 }
 0xf8e   :  { %2583 = vmatmul.mubr.msk.f32.gmra.mrb[28].mxu0 %vm416_vm1, %v1189_v7 }
 0xf8f   :  { %1344 = vmatprep.mubr.f32.mxu0 %v3109_v3 }
 0xf92   :  { %2584 = vmatmul.mubr.msk.f32.gmra.mrb[30].mxu0 %vm416_vm1, %v1186_v9 }
 0xf93   :  { %1350 = vmatprep.mubr.f32.mxu0 %v3109_v3 }
 0xf96   :  { %2585 = vmatmul.mubr.msk.f32.gmra.mrb[32].mxu0 %vm416_vm1, %v1183_v11 }
 0xf97   :  { %1356 = vmatprep.mubr.f32.mxu0 %v3109_v3 }
 0xf9a   :  { %2586 = vmatmul.mubr.msk.f32.gmra.mrb[34].mxu0 %vm416_vm1, %v1180_v18 }
 0xf9b   :  { %1427 = vmatprep.mubr.f32.mxu0 %v3109_v3 }
 0xf9e   :  { %2587 = vmatmul.mubr.msk.f32.vlgmr.msra.gmra.mrb[20].mxu0 %vm416_vm1, %v1180_v18 }
 0xf9f   :  { %1433 = vmatprep.mubr.f32.mxu0 %v3109_v3  ;;  %2895 = vmatpush1.bf16.msra.mxu0 %v3648_v14 }
 0xfa0   :  { %2897 = vmatprep.subr.bf16.mxu0 %v3658_v25 }
 0xfa2   :  { %2588 = vmatmul.mubr.msk.f32.gmra.mrb[22].mxu0 %vm416_vm1, %v1183_v11 }
 0xfa3   :  { %1439 = vmatprep.mubr.f32.mxu0 %v3109_v3  ;;  %2899 = vmatpush1.bf16.msra.mxu0 %v3666_v20 }
 0xfa4   :  { %2901 = vmatprep.subr.bf16.mxu0 %v3676_v26 }
 0xfa6   :  { %2589 = vmatmul.mubr.msk.f32.gmra.mrb[24].mxu0 %vm416_vm1, %v1186_v9 }
 0xfa7   :  { %1445 = vmatprep.mubr.f32.mxu0 %v3109_v3  ;;  %2903 = vmatpush1.bf16.msra.mxu0 %v3684_v19 }
 0xfa8   :  { %2905 = vmatprep.subr.bf16.mxu0 %v3694_v53 }
 0xfaa   :  { %2590 = vmatmul.mubr.msk.f32.gmra.mrb[26].mxu0 %vm416_vm1, %v1189_v7 }
 0xfab   :  { %1451 = vmatprep.mubr.f32.mxu0 %v3109_v3  ;;  %2907 = vmatpush1.bf16.msra.mxu0 %v3702_v47 }
 0xfac   :  { %2925 = vmatprep.subr.bf16.mxu0 %v3640_v12 }
 0xfae   :  { %2591 = vmatmul.mubr.msk.f32.gmra.mrb[28].mxu0 %vm416_vm1, %v1190_v1 }
 0xfaf   :  { %1457 = vmatprep.mubr.f32.mxu0 %v3109_v3 }
 0xfb2   :  { %2592 = vmatmul.mubr.msk.f32.gmra.mrb[30].mxu0 %vm416_vm1, %v1191_v63 }
 0xfb3   :  { %1463 = vmatprep.mubr.f32.mxu0 %v3109_v3 }
 0xfb6   :  { %2593 = vmatmul.mubr.msk.f32.gmra.mrb[32].mxu0 %vm416_vm1, %v1192_v48  ;;  %v1605_v48 = vadd.f32 %v3872_v59, %v1595_v30 }
 0xfb7   :  { %1469 = vmatprep.mubr.f32.mxu0 %v3109_v3 }
 0xfba   :  { %2594 = vmatmul.mubr.msk.f32.gmra.mrb[34].mxu0 %vm416_vm1, %v3745_v31 }
 0xfbb   :  { %1971 = vmatprep.mubr.f32.mxu0 %v3109_v3 }
0x1071   :  { %v1429_v23 = vpop.f32.mrb[20].mxu0 }
0x1072   :  { %v1488_v16 = vadd.f32 %v1481_v52, %v1429_v23  ;;  %v1431_v13 = vpop.f32.mrb[21].mxu0 }
0x1073   :  { %v1489_v62 = vadd.f32 %v1485_v15, %v1431_v13 }
0x1074   :  { %v1598_v27 = vadd.f32 %v1593_v2, %v1488_v16 }
0x1075   :  { %v1435_v44 = vpop.f32.mrb[22].mxu0 }
0x1076   :  { %v2596_v28 = vmul.f32 -1.442695, %v1598_v27  ;;  %v1490_v49 = vadd.f32 %v1481_v52, %v1435_v44  ;;  %v1437_v22 = vpop.f32.mrb[23].mxu0 }
0x1077   :  { %v3849_v24 = vadd.f32 %v1485_v15, %v1437_v22 }
0x1078   :  { %3057 = vpow2.f32 %v2596_v28 }
0x1079   :  { %v1441_v17 = vpop.f32.mrb[24].mxu0 }
0x107a   :  { %v3851_v29 = vadd.f32 %v1481_v52, %v1441_v17  ;;  %v1443_v33 = vpop.f32.mrb[25].mxu0 }
0x107b   :  { %v3853_v34 = vadd.f32 %v1485_v15, %v1443_v33 }
0x107d   :  { %v1447_v6 = vpop.f32.mrb[26].mxu0 }
0x107e   :  { %v3855_v37 = vadd.f32 %v1481_v52, %v1447_v6  ;;  %v1449_v40 = vpop.f32.mrb[27].mxu0 }
0x107f   :  { %v3857_v42 = vadd.f32 %v1485_v15, %v1449_v40 }
0x1081   :  { %v1453_v5 = vpop.f32.mrb[28].mxu0 }
0x1082   :  { %v3058_v10 = vpop.eup %3057  ;;  %v3859_v45 = vadd.f32 %v1481_v52, %v1453_v5  ;;  %v1455_v32 = vpop.f32.mrb[29].mxu0 }
0x1083   :  { %v1602_v50 = vadd.f32 1.0, %v3058_v10  ;;  %v3861_v36 = vadd.f32 %v1485_v15, %v1455_v32 }
0x1085   :  { %3059 = vrcp.f32 %v1602_v50  ;;  %v1459_v54 = vpop.f32.mrb[30].mxu0 }
0x1086   :  { %v3863_v55 = vadd.f32 %v1481_v52, %v1459_v54  ;;  %v1461_v57 = vpop.f32.mrb[31].mxu0 }
0x1087   :  { %v3865_v31 = vadd.f32 %v1485_v15, %v1461_v57 }
0x1089   :  { %v1465_v58 = vpop.f32.mrb[32].mxu0 }
0x108a   :  { %v3867_v35 = vadd.f32 %v1481_v52, %v1465_v58  ;;  %v1467_v38 = vpop.f32.mrb[33].mxu0 }
0x108b   :  { %v3874_v43 = vadd.f32 %v1485_v15, %v1467_v38 }
0x108d   :  { %v1471_v46 = vpop.f32.mrb[34].mxu0 }
0x108e   :  { %v3877_v51 = vadd.f32 %v1481_v52, %v1471_v46  ;;  %v1473_v21 = vpop.f32.mrb[35].mxu0 }
0x108f   :  { %v3060_v39 = vpop.eup %3059  ;;  %v3879_v60 = vadd.f32 %v1485_v15, %v1473_v21 }
0x1090   :  { %v1606_v41 = vmul.f32 %v3060_v39, %v1605_v48  ;;  %v1609_v1 = vsub.f32 1.0, %v3060_v39  ;;  %v1615_v9 = vmul.f32 0.0, %v3060_v39 }
0x1092   :  { %v1607_v63 = vadd.f32 %v1606_v41, %v1489_v62 }
0x1094   :  { %3061 = vtanh.f32 %v1607_v63 }
0x109e   :  { %v3062_v0 = vpop.eup %3061 }
0x109f   :  { %1611 = vrot.lane.b32.xlu0 %v3062_v0, %s3110_s19 }
0x1111   :  { %v1612_v7 = vpop.permute.xlu0 %1611 }
0x1112   :  { %v1614_v11 = vmul.f32 %v1612_v7, %v1609_v1 }
0x1114   :  { %v1616_v18 = vadd.f32 %v1615_v9, %v1614_v11 }
0x1116   :  { %1618 = vrot.lane.b32.xlu1 %v1616_v18, %s3110_s19 }
0x1188   :  { %v3883_v2 = vpop.permute.xlu1 %1618 }
0x1189   :  { %2597 = vmatmul.mubr.msk.f32.vlgmr.msra.gmra.mrb[14].mxu1 %vm416_vm1, %v3883_v2 }
0x118a   :  { %2863 = vmatpush1.bf16.msra.mxu1 %v3648_v14  ;;  %1781 = vmatprep.mubr.f32.mxu1 %v3109_v3 }
0x118b   :  { %2865 = vmatprep.subr.bf16.mxu1 %v3658_v25 }
0x118e   :  { %2867 = vmatpush1.bf16.msra.mxu1 %v3666_v20 }
0x118f   :  { %2869 = vmatprep.subr.bf16.mxu1 %v3676_v26 }
0x1192   :  { %2871 = vmatpush1.bf16.msra.mxu1 %v3684_v19 }
0x1193   :  { %2873 = vmatprep.subr.bf16.mxu1 %v3694_v53 }
0x1196   :  { %2875 = vmatpush1.bf16.msra.mxu1 %v3702_v47 }
0x1197   :  { %2877 = vmatprep.subr.bf16.mxu1 %v3640_v12 }
0x125c   :  { %v1688_v30 = vpop.f32.mrb[14].mxu1 }
0x125d   :  { %v1693_v61 = vadd.f32 %v1688_v30, %v1490_v49  ;;  %v1690_v52 = vpop.f32.mrb[15].mxu1 }
0x125e   :  { %v1700_v27 = vadd.f32 %v3872_v59, %v1690_v52 }
0x125f   :  { %v2598_v23 = vmul.f32 -1.442695, %v1693_v61 }
0x1261   :  { %3063 = vpow2.f32 %v2598_v23 }
0x126b   :  { %v3064_v16 = vpop.eup %3063 }
0x126c   :  { %v1697_v13 = vadd.f32 1.0, %v3064_v16 }
0x126e   :  { %3065 = vrcp.f32 %v1697_v13 }
0x1278   :  { %v3066_v15 = vpop.eup %3065 }
0x1279   :  { %v1701_v44 = vmul.f32 %v3066_v15, %v1700_v27  ;;  %v1704_v17 = vsub.f32 1.0, %v3066_v15  ;;  %v1710_v6 = vmul.f32 %v3066_v15, %v1616_v18 }
0x127b   :  { %v1702_v28 = vadd.f32 %v1701_v44, %v3849_v24 }
0x127d   :  { %3067 = vtanh.f32 %v1702_v28 }
0x1287   :  { %v3068_v22 = vpop.eup %3067 }
0x1288   :  { %1706 = vrot.lane.b32.xlu0 %v3068_v22, %s3110_s19 }
0x12fa   :  { %v1707_v33 = vpop.permute.xlu0 %1706 }
0x12fb   :  { %v1709_v49 = vmul.f32 %v1707_v33, %v1704_v17 }
0x12fd   :  { %v1711_v40 = vadd.f32 %v1710_v6, %v1709_v49 }
0x12ff   :  { %1713 = vrot.lane.b32.xlu1 %v1711_v40, %s3110_s19 }
0x1371   :  { %v3900_v5 = vpop.permute.xlu1 %1713 }
0x1372   :  { %2599 = vmatmul.mubr.msk.f32.vlgmr.msra.gmra.mrb[16].mxu1 %vm416_vm1, %v3900_v5 }
0x1373   :  { %2879 = vmatpush1.bf16.msra.mxu1 %v3648_v14  ;;  %1876 = vmatprep.mubr.f32.mxu1 %v3109_v3 }
0x1374   :  { %2881 = vmatprep.subr.bf16.mxu1 %v3658_v25 }
0x1377   :  { %2883 = vmatpush1.bf16.msra.mxu1 %v3666_v20 }
0x1378   :  { %2885 = vmatprep.subr.bf16.mxu1 %v3676_v26 }
0x137b   :  { %2887 = vmatpush1.bf16.msra.mxu1 %v3684_v19 }
0x137c   :  { %2889 = vmatprep.subr.bf16.mxu1 %v3694_v53 }
0x137f   :  { %2891 = vmatpush1.bf16.msra.mxu1 %v3702_v47 }
0x1380   :  { %2909 = vmatprep.subr.bf16.mxu1 %v3640_v12 }
0x1445   :  { %v1783_v24 = vpop.f32.mrb[16].mxu1 }
0x1446   :  { %v1788_v10 = vadd.f32 %v1783_v24, %v3851_v29  ;;  %v1785_v32 = vpop.f32.mrb[17].mxu1 }
0x1447   :  { %v1795_v58 = vadd.f32 %v3872_v59, %v1785_v32 }
0x1448   :  { %v2600_v50 = vmul.f32 -1.442695, %v1788_v10 }
0x144a   :  { %3069 = vpow2.f32 %v2600_v50 }
0x1454   :  { %v3070_v54 = vpop.eup %3069 }
0x1455   :  { %v1792_v57 = vadd.f32 1.0, %v3070_v54 }
0x1457   :  { %3071 = vrcp.f32 %v1792_v57 }
0x1461   :  { %v3072_v38 = vpop.eup %3071 }
0x1462   :  { %v1796_v46 = vmul.f32 %v3072_v38, %v1795_v58  ;;  %v1799_v39 = vsub.f32 1.0, %v3072_v38  ;;  %v1805_v41 = vmul.f32 %v3072_v38, %v1711_v40 }
0x1464   :  { %v1797_v48 = vadd.f32 %v1796_v46, %v3853_v34 }
0x1466   :  { %3073 = vtanh.f32 %v1797_v48 }
0x1470   :  { %v3074_v21 = vpop.eup %3073 }
0x1471   :  { %1801 = vrot.lane.b32.xlu0 %v3074_v21, %s3110_s19 }
0x14e3   :  { %v1802_v62 = vpop.permute.xlu0 %1801 }
0x14e4   :  { %v1804_v29 = vmul.f32 %v1802_v62, %v1799_v39 }
0x14e6   :  { %v1806_v63 = vadd.f32 %v1805_v41, %v1804_v29 }
0x14e8   :  { %1808 = vrot.lane.b32.xlu1 %v1806_v63, %s3110_s19 }
0x155a   :  { %v3918_v0 = vpop.permute.xlu1 %1808 }
0x155b   :  { %2601 = vmatmul.mubr.msk.f32.vlgmr.msra.gmra.mrb[18].mxu1 %vm416_vm1, %v3918_v0 }
0x155c   :  { %2911 = vmatpush1.bf16.msra.mxu1 %v3648_v14  ;;  %2066 = vmatprep.mubr.f32.mxu1 %v3109_v3 }
0x155d   :  { %2913 = vmatprep.subr.bf16.mxu1 %v3658_v25 }
0x1560   :  { %2915 = vmatpush1.bf16.msra.mxu1 %v3666_v20 }
0x1561   :  { %2917 = vmatprep.subr.bf16.mxu1 %v3676_v26 }
0x1564   :  { %2919 = vmatpush1.bf16.msra.mxu1 %v3684_v19 }
0x1565   :  { %2921 = vmatprep.subr.bf16.mxu1 %v3694_v53 }
0x1568   :  { %2923 = vmatpush1.bf16.msra.mxu1 %v3702_v47 }
0x1569   :  { %2941 = vmatprep.subr.bf16.mxu1 %v3640_v12 }
0x162e   :  { %v1878_v34 = vpop.f32.mrb[18].mxu1 }
0x162f   :  { %v1883_v1 = vadd.f32 %v1878_v34, %v3855_v37  ;;  %v1880_v7 = vpop.f32.mrb[19].mxu1 }
0x1630   :  { %v1890_v30 = vadd.f32 %v3872_v59, %v1880_v7 }
0x1631   :  { %v2602_v9 = vmul.f32 -1.442695, %v1883_v1 }
0x1633   :  { %3075 = vpow2.f32 %v2602_v9 }
0x163d   :  { %v3076_v11 = vpop.eup %3075 }
0x163e   :  { %v1887_v18 = vadd.f32 1.0, %v3076_v11 }
0x1640   :  { %3077 = vrcp.f32 %v1887_v18 }
0x164a   :  { %v3078_v61 = vpop.eup %3077 }
0x164b   :  { %v1891_v52 = vmul.f32 %v3078_v61, %v1890_v30  ;;  %v1894_v12 = vsub.f32 1.0, %v3078_v61  ;;  %v1900_v27 = vmul.f32 %v3078_v61, %v1806_v63 }
0x164d   :  { %v1892_v23 = vadd.f32 %v1891_v52, %v3857_v42 }
0x164f   :  { %3079 = vtanh.f32 %v1892_v23 }
0x1659   :  { %v3080_v16 = vpop.eup %3079 }
0x165a   :  { %1896 = vrot.lane.b32.xlu0 %v3080_v16, %s3110_s19 }
0x16cc   :  { %v1897_v13 = vpop.permute.xlu0 %1896 }
0x16cd   :  { %v1899_v37 = vmul.f32 %v1897_v13, %v1894_v12 }
0x16cf   :  { %v1901_v15 = vadd.f32 %v1900_v27, %v1899_v37 }
0x16d1   :  { %1903 = vrot.lane.b32.xlu1 %v1901_v15, %s3110_s19 }
0x1743   :  { %v1904_v44 = vpop.permute.xlu1 %1903 }
0x1744   :  { %2603 = vmatmul.mubr.msk.f32.vlgmr.msra.gmra.mrb[36].mxu0 %vm416_vm1, %v1904_v44 }
0x1745   :  { %2927 = vmatpush1.bf16.msra.mxu0 %v3648_v14  ;;  %2161 = vmatprep.mubr.f32.mxu0 %v3109_v3 }
0x1746   :  { %2929 = vmatprep.subr.bf16.mxu0 %v3658_v25 }
0x1749   :  { %2931 = vmatpush1.bf16.msra.mxu0 %v3666_v20 }
0x174a   :  { %2933 = vmatprep.subr.bf16.mxu0 %v3676_v26 }
0x174d   :  { %2935 = vmatpush1.bf16.msra.mxu0 %v3684_v19 }
0x174e   :  { %2937 = vmatprep.subr.bf16.mxu0 %v3694_v53 }
0x1751   :  { %2939 = vmatpush1.bf16.msra.mxu0 %v3702_v47 }
0x1817   :  { %v1973_v42 = vpop.f32.mrb[36].mxu0 }
0x1818   :  { %v1978_v28 = vadd.f32 %v1973_v42, %v3859_v45  ;;  %v1975_v22 = vpop.f32.mrb[37].mxu0 }
0x1819   :  { %v1985_v49 = vadd.f32 %v3872_v59, %v1975_v22 }
0x181a   :  { %v2604_v17 = vmul.f32 -1.442695, %v1978_v28 }
0x181c   :  { %3081 = vpow2.f32 %v2604_v17 }
0x1826   :  { %v3082_v33 = vpop.eup %3081 }
0x1827   :  { %v1982_v6 = vadd.f32 1.0, %v3082_v33 }
0x1829   :  { %3083 = vrcp.f32 %v1982_v6 }
0x1833   :  { %v3084_v40 = vpop.eup %3083 }
0x1834   :  { %v1986_v24 = vmul.f32 %v3084_v40, %v1985_v49  ;;  %v1989_v50 = vsub.f32 1.0, %v3084_v40  ;;  %v1995_v57 = vmul.f32 %v3084_v40, %v1901_v15 }
0x1836   :  { %v1987_v10 = vadd.f32 %v1986_v24, %v3861_v36 }
0x1838   :  { %3085 = vtanh.f32 %v1987_v10 }
0x1842   :  { %v3086_v32 = vpop.eup %3085 }
0x1843   :  { %1991 = vrot.lane.b32.xlu0 %v3086_v32, %s3110_s19 }
0x18b5   :  { %v1992_v54 = vpop.permute.xlu0 %1991 }
0x18b6   :  { %v1994_v45 = vmul.f32 %v1992_v54, %v1989_v50  ;;  %v2317_v54 = vld [vmem:[%s4096_s12 + $0x20] sm:$0xff] }
0x18b8   :  { %v1996_v58 = vadd.f32 %v1995_v57, %v1994_v45 }
0x18ba   :  { %1998 = vrot.lane.b32.xlu1 %v1996_v58, %s3110_s19 }
0x192c   :  { %v1999_v38 = vpop.permute.xlu1 %1998 }
0x192d   :  { %v2296_v46 = vsel %vm57_vm2, %v1904_v44, %v1999_v38  ;;  %v2297_v48 = vsel %vm57_vm2, %v1999_v38, %v1904_v44  ;;  %2605 = vmatmul.mubr.msk.f32.vlgmr.msra.gmra.mrb[20].mxu1 %vm416_vm1, %v1999_v38 }
0x192e   :  { %2304 = vst.msk [vmem:[%s4095_s16 + $0x18] sm:$0xff] %vm416_vm1, %v2296_v46  ;;  %2305 = vst.msk [vmem:[%s4095_s16 + $0x20] sm:$0xff] %vm416_vm1, %v2297_v48  ;;  %2943 = vmatpush1.bf16.msra.mxu1 %v3648_v14  ;;  %2256 = vmatprep.mubr.f32.mxu1 %v3109_v3 }
0x192f   :  { %2945 = vmatprep.subr.bf16.mxu1 %v3658_v25 }
0x1932   :  { %2947 = vmatpush1.bf16.msra.mxu1 %v3666_v20 }
0x1933   :  { %2949 = vmatprep.subr.bf16.mxu1 %v3676_v26 }
0x1936   :  { %2951 = vmatpush1.bf16.msra.mxu1 %v3684_v19 }
0x1937   :  { %2953 = vmatprep.subr.bf16.mxu1 %v3694_v53 }
0x193a   :  { %2955 = vmatpush1.bf16.msra.mxu1 %v3702_v47 }
0x1a00   :  { %v2068_v36 = vpop.f32.mrb[20].mxu1 }
0x1a01   :  { %v2073_v21 = vadd.f32 %v2068_v36, %v3863_v55  ;;  %v2070_v39 = vpop.f32.mrb[21].mxu1  ;;  %v2313_v36 = vld [vmem:[%s4096_s12] sm:$0xff] }
0x1a02   :  { %v2080_v25 = vadd.f32 %v3872_v59, %v2070_v39 }
0x1a03   :  { %v2606_v62 = vmul.f32 -1.442695, %v2073_v21  ;;  %v2314_v21 = vld [vmem:[%s4096_s12 + $0x8] sm:$0xff] }
0x1a04   :  { %v2964_v39 = vpack.c.bf16 %v2314_v21, %v2313_v36 }
0x1a05   :  { %3087 = vpow2.f32 %v2606_v62 }
0x1a0f   :  { %v3088_v14 = vpop.eup %3087 }
0x1a10   :  { %v2077_v3 = vadd.f32 1.0, %v3088_v14 }
0x1a12   :  { %3089 = vrcp.f32 %v2077_v3 }
0x1a1c   :  { %v3090_v20 = vpop.eup %3089 }
0x1a1d   :  { %v2081_v41 = vmul.f32 %v3090_v20, %v2080_v25  ;;  %v2084_v53 = vsub.f32 1.0, %v3090_v20  ;;  %v2090_v29 = vmul.f32 %v3090_v20, %v1996_v58  ;;  %v2315_v20 = vld [vmem:[%s4096_s12 + $0x10] sm:$0xff] }
0x1a1f   :  { %v2082_v26 = vadd.f32 %v2081_v41, %v3865_v31 }
0x1a21   :  { %3091 = vtanh.f32 %v2082_v26 }
0x1a2b   :  { %v3092_v19 = vpop.eup %3091 }
0x1a2c   :  { %2086 = vrot.lane.b32.xlu0 %v3092_v19, %s3110_s19  ;;  %v2615_v19 = vld [vmem:[%s4097_s13] ss:$0 sm:$0xff] }
0x1a9e   :  { %v2087_v47 = vpop.permute.xlu0 %2086 }
0x1a9f   :  { %v2089_v55 = vmul.f32 %v2087_v47, %v2084_v53 }
0x1aa1   :  { %v2091_v63 = vadd.f32 %v2090_v29, %v2089_v55 }
0x1aa3   :  { %2093 = vrot.lane.b32.xlu1 %v2091_v63, %s3110_s19 }
0x1b15   :  { %v2094_v34 = vpop.permute.xlu1 %2093 }
0x1b16   :  { %v2293_v1 = vsel %vm57_vm2, %v3918_v0, %v2094_v34  ;;  %v2298_v31 = vsel %vm57_vm2, %v2094_v34, %v3918_v0  ;;  %2607 = vmatmul.mubr.msk.f32.vlgmr.msra.gmra.mrb[38].mxu0 %vm416_vm1, %v2094_v34 }
0x1b17   :  { %2303 = vst.msk [vmem:[%s4095_s16 + $0x10] sm:$0xff] %vm416_vm1, %v2293_v1  ;;  %2306 = vst.msk [vmem:[%s4095_s16 + $0x28] sm:$0xff] %vm416_vm1, %v2298_v31 }
0x1be9   :  { %v2163_v7 = vpop.f32.mrb[38].mxu0 }
0x1bea   :  { %v2168_v9 = vadd.f32 %v2163_v7, %v3867_v35  ;;  %v2165_v11 = vpop.f32.mrb[39].mxu0 }
0x1beb   :  { %v2175_v61 = vadd.f32 %v3872_v59, %v2165_v11 }
0x1bec   :  { %v2608_v18 = vmul.f32 -1.442695, %v2168_v9 }
0x1bee   :  { %3093 = vpow2.f32 %v2608_v18 }
0x1bf8   :  { %v3094_v30 = vpop.eup %3093 }
0x1bf9   :  { %v2172_v0 = vadd.f32 1.0, %v3094_v30 }
0x1bfb   :  { %3095 = vrcp.f32 %v2172_v0 }
0x1c05   :  { %v3096_v52 = vpop.eup %3095 }
0x1c06   :  { %v2176_v23 = vmul.f32 %v3096_v52, %v2175_v61  ;;  %v2179_v13 = vsub.f32 1.0, %v3096_v52  ;;  %v2185_v37 = vmul.f32 %v3096_v52, %v2091_v63 }
0x1c08   :  { %v2177_v16 = vadd.f32 %v2176_v23, %v3874_v43 }
0x1c0a   :  { %3097 = vtanh.f32 %v2177_v16 }
0x1c14   :  { %v3098_v12 = vpop.eup %3097 }
0x1c15   :  { %2181 = vrot.lane.b32.xlu0 %v3098_v12, %s3110_s19 }
0x1c87   :  { %v2182_v27 = vpop.permute.xlu0 %2181 }
0x1c88   :  { %v2184_v35 = vmul.f32 %v2182_v27, %v2179_v13 }
0x1c8a   :  { %v2186_v15 = vadd.f32 %v2185_v37, %v2184_v35  ;;  %v2616_v35 = vld [vmem:[%s4098_s14] ss:$0 sm:$0xff] }
0x1c8c   :  { %2188 = vrot.lane.b32.xlu1 %v2186_v15, %s3110_s19 }
0x1cfe   :  { %v2189_v44 = vpop.permute.xlu1 %2188 }
0x1cff   :  { %v2290_v42 = vsel %vm57_vm2, %v3900_v5, %v2189_v44  ;;  %v2299_v43 = vsel %vm57_vm2, %v2189_v44, %v3900_v5  ;;  %2609 = vmatmul.mubr.msk.f32.vlgmr.msra.gmra.mrb[22].mxu1 %vm416_vm1, %v2189_v44  ;;  %v2617_v44 = vld [vmem:[%s4099_s15] ss:$0 sm:$0xff] }
0x1d00   :  { %2302 = vst.msk [vmem:[%s4095_s16 + $0x8] sm:$0xff] %vm416_vm1, %v2290_v42  ;;  %2307 = vst.msk [vmem:[%s4095_s16 + $0x30] sm:$0xff] %vm416_vm1, %v2299_v43 }
0x1dd2   :  { %v2258_v28 = vpop.f32.mrb[22].mxu1 }
0x1dd3   :  { %v2263_v22 = vadd.f32 %v2258_v28, %v3877_v51  ;;  %v2260_v17 = vpop.f32.mrb[23].mxu1 }
0x1dd4   :  { %v2270_v49 = vadd.f32 %v3872_v59, %v2260_v17  ;;  %v2318_v59 = vld [vmem:[%s4096_s12 + $0x28] sm:$0xff] }
0x1dd5   :  { %v2610_v33 = vmul.f32 -1.442695, %v2263_v22  ;;  %v2956_v58 = vpack.c.bf16 %v2318_v59, %v2317_v54 }
0x1dd7   :  { %3099 = vpow2.f32 %v2610_v33  ;;  %2957 = vmatprep.subr.bf16.mxu0 %v2956_v58 }
0x1dd8   :  { %2959 = vmatpush3.bf16.msra.mxu0 %v2956_v58 }
0x1de1   :  { %v3100_v6 = vpop.eup %3099 }
0x1de2   :  { %v2267_v5 = vadd.f32 1.0, %v3100_v6 }
0x1de4   :  { %3101 = vrcp.f32 %v2267_v5 }
0x1dee   :  { %v3102_v40 = vpop.eup %3101 }
0x1def   :  { %v2271_v24 = vmul.f32 %v3102_v40, %v2270_v49  ;;  %v2274_v51 = vsub.f32 1.0, %v3102_v40  ;;  %v2280_v57 = vmul.f32 %v3102_v40, %v2186_v15 }
0x1df1   :  { %v2272_v10 = vadd.f32 %v2271_v24, %v3879_v60  ;;  %v2319_v60 = vld [vmem:[%s4096_s12 + $0x30] sm:$0xff] }
0x1df3   :  { %3103 = vtanh.f32 %v2272_v10 }
0x1dfd   :  { %v3104_v32 = vpop.eup %3103 }
0x1dfe   :  { %2276 = vrot.lane.b32.xlu0 %v3104_v32, %s3110_s19 }
0x1e02   :  { %2309 = vrot.lane.b32.xlu0 %v3630_v8, %s3111_s4  ;;  %v2320_v8 = vld [vmem:[%s4096_s12 + $0x38] sm:$0xff] }
0x1e03   :  { %v2960_v38 = vpack.c.bf16 %v2320_v8, %v2319_v60 }
0x1e05   :  { %2961 = vmatprep.subr.bf16.mxu0 %v2960_v38 }
0x1e06   :  { %2963 = vmatpush3.bf16.msra.mxu0 %v2960_v38 }
0x1e07   :  { %2965 = vmatprep.subr.bf16.mxu0 %v2964_v39 }
0x1e70   :  { %v2277_v50 = vpop.permute.xlu0 %2276 }
0x1e71   :  { %v2279_v45 = vmul.f32 %v2277_v50, %v2274_v51 }
0x1e73   :  { %v2281_v46 = vadd.f32 %v2280_v57, %v2279_v45 }
0x1e74   :  { %v2310_v48 = vpop.permute.xlu0 %2309 }
0x1e75   :  { %2311 = vrot.lane.b32.xlu1 %v2281_v46, %s3111_s4 }
0x1e79   :  { %2284 = vrot.lane.b32.xlu1 %v2281_v46, %s3110_s19 }
0x1e7d   :  { %2402 = vrot.lane.b32.xlu1 %v2310_v48, %s3110_s19 }
0x1ee7   :  { %v2312_v62 = vpop.permute.xlu1 %2311 }
0x1ee8   :  { %2321 = vrot.lane.b32.xlu0 %v2312_v62, %s3110_s19 }
0x1eeb   :  { %v2285_v14 = vpop.permute.xlu1 %2284 }
0x1eec   :  { %v2287_v3 = vsel %vm57_vm2, %v3883_v2, %v2285_v14  ;;  %v2300_v25 = vsel %vm57_vm2, %v2285_v14, %v3883_v2  ;;  %2638 = vmatprep.mubr.msk.f32.mxu0 %vm90_vm0, %v2285_v14  ;;  %v2968_v2 = vpack.c.bf16 %v2316_v56, %v2315_v20 }
0x1eed   :  { %2301 = vst.msk [vmem:[%s4095_s16] sm:$0xff] %vm416_vm1, %v2287_v3  ;;  %2308 = vst.msk [vmem:[%s4095_s16 + $0x38] sm:$0xff] %vm416_vm1, %v2300_v25 }
0x1eef   :  { %v2403_v26 = vpop.permute.xlu1 %2402 }
0x1f5a   :  { %v2322_v41 = vpop.permute.xlu0 %2321 }
0x1f5b   :  { %2639 = vmatmul.mubr.msk.f32.vlgmr.msra.gmra.mrb[40].mxu0 %vm90_vm0, %v2322_v41 }
0x1f5c   :  { %2967 = vmatpush3.bf16.msra.mxu0 %v2964_v39  ;;  %2649 = vmatprep.mubr.msk.f32.mxu0 %vm90_vm0, %v3733_v4 }
0x1f5d   :  { %2969 = vmatprep.subr.bf16.mxu0 %v2968_v2 }
0x1f60   :  { %2971 = vmatpush3.bf16.msra.mxu0 %v2968_v2 }
0x1f63   :  { %2650 = vmatmul.mubr.msk.f32.vlgmr.msra.gmra.mrb[40].mxu0 %vm90_vm0, %v2403_v26 }
0x2036   :  { %v2651_v53 = vpop.f32.mrb[40].mxu0 }
0x2037   :  { %v2491_v47 = vadd.f32 %v2651_v53, %v2615_v19  ;;  %v2474_v29 = vpop.f32.mrb[41].mxu0 }
0x2038   :  { %v2490_v55 = vadd.f32 %v2615_v19, %v2474_v29 }
0x2039   :  { %v2495_v63 = vsel %vm90_vm0, %v2491_v47, 0.0 }
0x203a   :  { %2496 = vadd.xlane.f32.xlu1 %v2495_v63  ;;  %v2492_v34 = vsel %vm90_vm0, %v2490_v55, 0.0 }
0x203b   :  { %2493 = vadd.xlane.f32.xlu0 %v2492_v34 }
0x20c7   :  { %v2497_v4 = vpop.xlane.xlu1 %2496 }
0x20c8   :  { %v2500_v1 = vmul.f32 0.03125, %v2497_v4  ;;  %v2494_v31 = vpop.xlane.xlu0 %2493 }
0x20c9   :  { %v2499_v7 = vmul.f32 0.03125, %v2494_v31 }
0x20ca   :  { %v2502_v9 = vsub.f32 %v2491_v47, %v2500_v1 }
0x20cb   :  { %v2501_v11 = vsub.f32 %v2490_v55, %v2499_v7 }
0x20cc   :  { %v2504_v0 = vmul.f32 %v2502_v9, %v2502_v9 }
0x20cd   :  { %v2503_v18 = vmul.f32 %v2501_v11, %v2501_v11 }
0x20ce   :  { %v2508_v61 = vsel %vm90_vm0, %v2504_v0, 0.0 }
0x20cf   :  { %v2505_v30 = vsel %vm90_vm0, %v2503_v18, 0.0 }
0x20d0   :  { %2506 = vadd.xlane.f32.xlu0 %v2505_v30 }
0x20d4   :  { %2509 = vadd.xlane.f32.xlu0 %v2508_v61 }
0x215d   :  { %v2507_v52 = vpop.xlane.xlu0 %2506 }
0x215e   :  { %v2511_v23 = vmul.f32 0.03125, %v2507_v52 }
0x2160   :  { %v2513_v16 = vadd.f32 1e-05, %v2511_v23 }
0x2161   :  { %v2510_v12 = vpop.xlane.xlu0 %2509 }
0x2162   :  { %3105 = vrsqrt.f32 %v2513_v16  ;;  %v2512_v13 = vmul.f32 0.03125, %v2510_v12 }
0x2164   :  { %v2514_v27 = vadd.f32 1e-05, %v2512_v13 }
0x2166   :  { %3107 = vrsqrt.f32 %v2514_v27 }
0x216c   :  { %v3106_v37 = vpop.eup %3105 }
0x216d   :  { %v2517_v15 = vmul.f32 %v3106_v37, %v2501_v11 }
0x216f   :  { %v2526_v42 = vmul.f32 %v2616_v35, %v2517_v15 }
0x2170   :  { %v3108_v43 = vpop.eup %3107 }
0x2171   :  { %v2535_v28 = vadd.f32 %v2617_v44, %v2526_v42  ;;  %v2518_v22 = vmul.f32 %v3108_v43, %v2502_v9 }
0x2173   :  { %2537 = vst.msk [vmem:[%s4100_s17] sm:$0xff] %vm90_vm0, %v2535_v28  ;;  %v2527_v17 = vmul.f32 %v2616_v35, %v2518_v22 }
0x2175   :  { %v2536_v33 = vadd.f32 %v2617_v44, %v2527_v17 }
0x2177   :  { %2538 = vst.msk [vmem:[%s4100_s17 + $0x8] sm:$0xff] %vm90_vm0, %v2536_v33 }

</bundles_post_ra>
